<compile_context>
chip_gen: v7x
topology: tpu7x:2x2x1
jax: 0.10.0
libtpu: 0.0.40
codegen_flags: <defaults>
</compile_context>

<pallas_src>
import math

import jax
import jax.numpy as jnp
from jax import lax
from jax.experimental import pallas as pl
from jax.experimental.pallas import tpu as pltpu

# ----------------------------- model config ---------------------------------
D_MODEL = 128                 # lane-dense (full 128-lane vreg)
N_HEADS = 2
D_HEAD = D_MODEL // N_HEADS
N_LAYERS = 2
FFN_DIM = 128                 # fused [w1|w3] -> 256-lane matmul output
VOCAB = 64
BOS_ID, PAD_ID, EOS_ID, UNK_ID = 0, 1, 2, 3
AA = "LAGVSERTIDPKQNFYMHWC"
AA2ID = {c: i + 4 for i, c in enumerate(AA)}   # simple deterministic tokenizer

NEG_INF = jnp.float32(-1e30)


# ----------------------------- kernel helpers --------------------------------
def _layernorm(x, g, b, eps=1e-5):
    mu = jnp.mean(x, axis=-1, keepdims=True)
    var = jnp.mean((x - mu) ** 2, axis=-1, keepdims=True)
    return (x - mu) * lax.rsqrt(var + eps) * g + b


# ----------------------------- fused forward kernel --------------------------
def _fused_esmc_kernel(tok_ref,                     # (S_pad, 1) int32 VMEM
                       bias_ref,                    # (S_pad, S_pad) f32 additive key mask
                       embed_ref,                   # (VOCAB, D)
                       ln1_g_ref, ln1_b_ref,        # (L, 1, D)
                       wqkv_ref, bqkv_ref,          # (L, D, 3D), (L, 1, 3D)
                       wo_ref, bo_ref,              # (L, D, D), (L, 1, D)
                       ln2_g_ref, ln2_b_ref,        # (L, 1, D)
                       w13_ref, w2_ref,             # (L, D, 2F), (L, F, D)
                       fin_g_ref, fin_b_ref,        # (1, D)
                       o_ref):                      # (S_pad, D) output
    s_pad = o_ref.shape[0]

    # ---- embedding gather as a one-hot MXU matmul (no serialized row gather) ----
    tok = tok_ref[...]                                             # (S, 1) int32
    vocab_ids = lax.broadcasted_iota(jnp.int32, (s_pad, VOCAB), 1)
    one_hot = (vocab_ids == tok).astype(jnp.float32)               # (S, VOCAB)
    x = jnp.dot(one_hot, embed_ref[...], preferred_element_type=jnp.float32)

    attn_bias = bias_ref[...]          # computed once, reused by every layer
    scale = 1.0 / math.sqrt(D_HEAD)

    # ---- static in-kernel layer loop (grid collapsed for the small config) ----
    for l in range(N_LAYERS):
        # attention block (pre-LN); one wide QKV matmul, lane-dense (3D = 384)
        h = _layernorm(x, ln1_g_ref[l], ln1_b_ref[l])
        qkv = jnp.dot(h, wqkv_ref[l], preferred_element_type=jnp.float32) + bqkv_ref[l]

        heads = []
        for hd in range(N_HEADS):      # H == 2: static unroll
            q = qkv[:, hd * D_HEAD:(hd + 1) * D_HEAD]
            k = qkv[:, D_MODEL + hd * D_HEAD:D_MODEL + (hd + 1) * D_HEAD]
            v = qkv[:, 2 * D_MODEL + hd * D_HEAD:2 * D_MODEL + (hd + 1) * D_HEAD]
            s = lax.dot_general(q, k, (((1,), (1,)), ((), ())),
                                preferred_element_type=jnp.float32) * scale + attn_bias
            m = jnp.max(s, axis=-1, keepdims=True)
            p = jnp.exp(s - m)
            denom = jnp.sum(p, axis=-1, keepdims=True)
            heads.append(jnp.dot(p, v, preferred_element_type=jnp.float32) / denom)

        # heads -> one (S, D) lane-dense slab; single fused output projection
        attn = jnp.concatenate(heads, axis=-1)
        x = x + jnp.dot(attn, wo_ref[l], preferred_element_type=jnp.float32) + bo_ref[l]

        # FFN block (pre-LN SwiGLU) with fused [w1 | w3] weight
        h = _layernorm(x, ln2_g_ref[l], ln2_b_ref[l])
        a13 = jnp.dot(h, w13_ref[l], preferred_element_type=jnp.float32)   # (S, 2F)
        a = a13[:, :FFN_DIM]
        g = a13[:, FFN_DIM:]
        hid = (a * jax.nn.sigmoid(a)) * g
        x = x + jnp.dot(hid, w2_ref[l], preferred_element_type=jnp.float32)

    # ---- final LN, single lane-dense writeback ----
    o_ref[...] = _layernorm(x, fin_g_ref[...], fin_b_ref[...]).astype(o_ref.dtype)


# ----------------------------- host wrapper -----------------------------------
def esmc_forward(params, tokens):
    """tokens: (S,) int32 -> embeddings (S, D_MODEL)  (== output.embeddings.squeeze())."""
    s_valid = int(tokens.shape[0])
    s_pad = max(8, ((s_valid + 7) // 8) * 8)          # sublane-aligned sequence

    toks = jnp.full((s_pad, 1), PAD_ID, jnp.int32).at[:s_valid, 0].set(tokens)
    # Additive key-padding bias, built once outside the kernel (hoisted from layers).
    key_idx = jnp.broadcast_to(jnp.arange(s_pad, dtype=jnp.int32)[None, :], (s_pad, s_pad))
    attn_bias = jnp.where(key_idx >= s_valid, NEG_INF, jnp.float32(0.0))

    n_inputs = 15
    in_specs = [pl.BlockSpec(memory_space=pltpu.MemorySpace.VMEM) for _ in range(n_inputs)]

    out = pl.pallas_call(
        _fused_esmc_kernel,
        out_shape=jax.ShapeDtypeStruct((s_pad, D_MODEL), jnp.float32),
        in_specs=in_specs,
        out_specs=pl.BlockSpec(memory_space=pltpu.MemorySpace.VMEM),
        # Tiny here; at real ESMC-300M scale keep this raised and stream bf16
        # layer weights over a grid=(L,) "arbitrary" axis instead.
        compiler_params=pltpu.CompilerParams(vmem_limit_bytes=64 * 1024 * 1024),
    )(toks, attn_bias,
      params["embed"],
      params["ln1_g"], params["ln1_b"],
      params["wqkv"], params["bqkv"],
      params["wo"], params["bo"],
      params["ln2_g"], params["ln2_b"],
      params["w13"], params["w2"],
      params["final_ln_g"], params["final_ln_b"])

    return out[:s_valid]                              # drop padded query rows


# ----------------------------- parameter init --------------------------------
def init_params(key):
    def dense(k, din, dout, scale=0.02):
        return scale * jax.random.normal(k, (din, dout), jnp.float32)

    keys = jax.random.split(key, 1 + N_LAYERS)
    layer_keys = [jax.random.split(keys[1 + li], 8) for li in range(N_LAYERS)]
    stack = lambda f: jnp.stack([f(lk) for lk in layer_keys], axis=0)

    return {
        "embed": 0.02 * jax.random.normal(keys[0], (VOCAB, D_MODEL), jnp.float32),
        "ln1_g": jnp.ones((N_LAYERS, 1, D_MODEL), jnp.float32),
        "ln1_b": jnp.zeros((N_LAYERS, 1, D_MODEL), jnp.float32),
        "wqkv": stack(lambda lk: dense(lk[0], D_MODEL, 3 * D_MODEL)),
        "bqkv": jnp.zeros((N_LAYERS, 1, 3 * D_MODEL), jnp.float32),
        "wo": stack(lambda lk: dense(lk[1], D_MODEL, D_MODEL)),
        "bo": jnp.zeros((N_LAYERS, 1, D_MODEL), jnp.float32),
        "ln2_g": jnp.ones((N_LAYERS, 1, D_MODEL), jnp.float32),
        "ln2_b": jnp.zeros((N_LAYERS, 1, D_MODEL), jnp.float32),
        # fused [w1 | w3] -> (L, D, 2F)
        "w13": stack(lambda lk: jnp.concatenate(
            [dense(lk[2], D_MODEL, FFN_DIM), dense(lk[3], D_MODEL, FFN_DIM)], axis=-1)),
        "w2": stack(lambda lk: dense(lk[4], FFN_DIM, D_MODEL)),
        "final_ln_g": jnp.ones((1, D_MODEL), jnp.float32),
        "final_ln_b": jnp.zeros((1, D_MODEL), jnp.float32),
    }


# ----------------------------- tokenizer -------------------------------------
def tokenize(sequence: str):
    ids = [BOS_ID] + [AA2ID.get(c, UNK_ID) for c in sequence] + [EOS_ID]
    return jnp.asarray(ids, dtype=jnp.int32)


# ----------------------------- main -------------------------------------------
if __name__ == "__main__":
    key = jax.random.PRNGKey(0)
    params = init_params(key)

    # mimic the PyTorch call:  forward(x) with x[0][1] = protein sequence string
    x_input = [("prot_0", "MKTAYIAKQR")]     # 10 residues -> S = 12 with BOS/EOS
    tokens = tokenize(x_input[0][1])         # (12,) int32

    embeddings = esmc_forward(params, tokens)
    jax.block_until_ready(embeddings)
    assert embeddings.shape == (tokens.shape[0], D_MODEL)
    print("KERNEL_OK")
</pallas_src>

<mosaic_0001>
module attributes {stable_mosaic.version = 11 : i64} {
  func.func @_fused_esmc_kernel(%arg0: memref<16x1xi32, #tpu.memory_space<vmem>>, %arg1: memref<16x16xf32, #tpu.memory_space<vmem>>, %arg2: memref<64x128xf32, #tpu.memory_space<vmem>>, %arg3: memref<2x1x128xf32, #tpu.memory_space<vmem>>, %arg4: memref<2x1x128xf32, #tpu.memory_space<vmem>>, %arg5: memref<2x128x384xf32, #tpu.memory_space<vmem>>, %arg6: memref<2x1x384xf32, #tpu.memory_space<vmem>>, %arg7: memref<2x128x128xf32, #tpu.memory_space<vmem>>, %arg8: memref<2x1x128xf32, #tpu.memory_space<vmem>>, %arg9: memref<2x1x128xf32, #tpu.memory_space<vmem>>, %arg10: memref<2x1x128xf32, #tpu.memory_space<vmem>>, %arg11: memref<2x128x256xf32, #tpu.memory_space<vmem>>, %arg12: memref<2x128x128xf32, #tpu.memory_space<vmem>>, %arg13: memref<1x128xf32, #tpu.memory_space<vmem>>, %arg14: memref<1x128xf32, #tpu.memory_space<vmem>>, %arg15: memref<16x128xf32, #tpu.memory_space<vmem>>) attributes {dimension_semantics = [], scalar_prefetch = 0 : i64, scratch_operands = 0 : i64, tpu.core_type = #tpu.core_type<tc>} {
    %c0 = arith.constant 0 : index
    %c0_0 = arith.constant 0 : index
    %0 = vector.load %arg0[%c0, %c0_0] : memref<16x1xi32, #tpu.memory_space<vmem>>, vector<16x1xi32>
    %1 = tpu.iota {dimensions = array<i32: 1>} : vector<16x64xi32>
    %2 = vector.broadcast %0 : vector<16x1xi32> to vector<16x64xi32>
    %3 = arith.cmpi eq, %1, %2 : vector<16x64xi32>
    %4 = arith.extui %3 : vector<16x64xi1> to vector<16x64xi32>
    %5 = arith.sitofp %4 : vector<16x64xi32> to vector<16x64xf32>
    %c0_1 = arith.constant 0 : index
    %c0_2 = arith.constant 0 : index
    %6 = vector.load %arg2[%c0_1, %c0_2] : memref<64x128xf32, #tpu.memory_space<vmem>>, vector<64x128xf32>
    %cst = arith.constant dense<0.000000e+00> : vector<16x128xf32>
    %7 = tpu.matmul %5, %6, %cst {dimension_numbers = #tpu.dot_dimension_numbers<[1], [0], [0], [1], [0, 0, 1, 1], [], []>} : vector<16x64xf32>, vector<64x128xf32>, vector<16x128xf32> -> vector<16x128xf32>
    %c0_3 = arith.constant 0 : index
    %c0_4 = arith.constant 0 : index
    %8 = vector.load %arg1[%c0_3, %c0_4] : memref<16x16xf32, #tpu.memory_space<vmem>>, vector<16x16xf32>
    %c0_5 = arith.constant 0 : index
    %c0_6 = arith.constant 0 : index
    %c0_7 = arith.constant 0 : index
    %9 = vector.load %arg3[%c0_5, %c0_6, %c0_7] : memref<2x1x128xf32, #tpu.memory_space<vmem>>, vector<1x1x128xf32>
    %10 = vector.shape_cast %9 : vector<1x1x128xf32> to vector<1x128xf32>
    %c0_8 = arith.constant 0 : index
    %c0_9 = arith.constant 0 : index
    %c0_10 = arith.constant 0 : index
    %11 = vector.load %arg4[%c0_8, %c0_9, %c0_10] : memref<2x1x128xf32, #tpu.memory_space<vmem>>, vector<1x1x128xf32>
    %12 = vector.shape_cast %11 : vector<1x1x128xf32> to vector<1x128xf32>
    %cst_11 = arith.constant dense<0.000000e+00> : vector<16xf32>
    %13 = vector.multi_reduction <add>, %7, %cst_11 [1] : vector<16x128xf32> to vector<16xf32>
    %14 = vector.shape_cast %13 : vector<16xf32> to vector<16x1xf32>
    %cst_12 = arith.constant 1.280000e+02 : f32
    %15 = vector.broadcast %cst_12 : f32 to vector<16x1xf32>
    %16 = arith.divf %14, %15 : vector<16x1xf32>
    %17 = vector.broadcast %16 : vector<16x1xf32> to vector<16x128xf32>
    %18 = arith.subf %7, %17 : vector<16x128xf32>
    %19 = arith.mulf %18, %18 : vector<16x128xf32>
    %cst_13 = arith.constant dense<0.000000e+00> : vector<16xf32>
    %20 = vector.multi_reduction <add>, %19, %cst_13 [1] : vector<16x128xf32> to vector<16xf32>
    %21 = vector.shape_cast %20 : vector<16xf32> to vector<16x1xf32>
    %cst_14 = arith.constant 1.280000e+02 : f32
    %22 = vector.broadcast %cst_14 : f32 to vector<16x1xf32>
    %23 = arith.divf %21, %22 : vector<16x1xf32>
    %24 = vector.broadcast %16 : vector<16x1xf32> to vector<16x128xf32>
    %25 = arith.subf %7, %24 : vector<16x128xf32>
    %cst_15 = arith.constant 9.99999974E-6 : f32
    %26 = vector.broadcast %cst_15 : f32 to vector<16x1xf32>
    %27 = arith.addf %23, %26 : vector<16x1xf32>
    %28 = math.rsqrt %27 : vector<16x1xf32>
    %29 = vector.broadcast %28 : vector<16x1xf32> to vector<16x128xf32>
    %30 = arith.mulf %25, %29 : vector<16x128xf32>
    %31 = vector.broadcast %10 : vector<1x128xf32> to vector<16x128xf32>
    %32 = arith.mulf %30, %31 : vector<16x128xf32>
    %33 = vector.broadcast %12 : vector<1x128xf32> to vector<16x128xf32>
    %34 = arith.addf %32, %33 : vector<16x128xf32>
    %c0_16 = arith.constant 0 : index
    %c0_17 = arith.constant 0 : index
    %c0_18 = arith.constant 0 : index
    %35 = vector.load %arg5[%c0_16, %c0_17, %c0_18] : memref<2x128x384xf32, #tpu.memory_space<vmem>>, vector<1x128x384xf32>
    %36 = vector.shape_cast %35 : vector<1x128x384xf32> to vector<128x384xf32>
    %cst_19 = arith.constant dense<0.000000e+00> : vector<16x384xf32>
    %37 = tpu.matmul %34, %36, %cst_19 {dimension_numbers = #tpu.dot_dimension_numbers<[1], [0], [0], [1], [0, 0, 1, 1], [], []>} : vector<16x128xf32>, vector<128x384xf32>, vector<16x384xf32> -> vector<16x384xf32>
    %c0_20 = arith.constant 0 : index
    %c0_21 = arith.constant 0 : index
    %c0_22 = arith.constant 0 : index
    %38 = vector.load %arg6[%c0_20, %c0_21, %c0_22] : memref<2x1x384xf32, #tpu.memory_space<vmem>>, vector<1x1x384xf32>
    %39 = vector.shape_cast %38 : vector<1x1x384xf32> to vector<1x384xf32>
    %40 = vector.broadcast %39 : vector<1x384xf32> to vector<16x384xf32>
    %41 = arith.addf %37, %40 : vector<16x384xf32>
    %42 = vector.extract_strided_slice %41 {offsets = [0, 0], sizes = [16, 64], strides = [1, 1]} : vector<16x384xf32> to vector<16x64xf32>
    %43 = vector.extract_strided_slice %41 {offsets = [0, 128], sizes = [16, 64], strides = [1, 1]} : vector<16x384xf32> to vector<16x64xf32>
    %44 = vector.extract_strided_slice %41 {offsets = [0, 256], sizes = [16, 64], strides = [1, 1]} : vector<16x384xf32> to vector<16x64xf32>
    %cst_23 = arith.constant dense<0.000000e+00> : vector<16x16xf32>
    %45 = tpu.matmul %42, %43, %cst_23 {dimension_numbers = #tpu.dot_dimension_numbers<[1], [1], [0], [0], [0, 0, 1, 0], [], []>} : vector<16x64xf32>, vector<16x64xf32>, vector<16x16xf32> -> vector<16x16xf32>
    %cst_24 = arith.constant 1.250000e-01 : f32
    %46 = vector.broadcast %cst_24 : f32 to vector<16x16xf32>
    %47 = arith.mulf %45, %46 : vector<16x16xf32>
    %48 = arith.addf %47, %8 : vector<16x16xf32>
    %cst_25 = arith.constant dense<0xFF800000> : vector<16xf32>
    %49 = vector.multi_reduction <maximumf>, %48, %cst_25 [1] : vector<16x16xf32> to vector<16xf32>
    %50 = vector.shape_cast %49 : vector<16xf32> to vector<16x1xf32>
    %51 = vector.broadcast %50 : vector<16x1xf32> to vector<16x16xf32>
    %52 = arith.subf %48, %51 : vector<16x16xf32>
    %53 = math.exp %52 : vector<16x16xf32>
    %cst_26 = arith.constant dense<0.000000e+00> : vector<16xf32>
    %54 = vector.multi_reduction <add>, %53, %cst_26 [1] : vector<16x16xf32> to vector<16xf32>
    %55 = vector.shape_cast %54 : vector<16xf32> to vector<16x1xf32>
    %cst_27 = arith.constant dense<0.000000e+00> : vector<16x64xf32>
    %56 = tpu.matmul %53, %44, %cst_27 {dimension_numbers = #tpu.dot_dimension_numbers<[1], [0], [0], [1], [0, 0, 1, 1], [], []>} : vector<16x16xf32>, vector<16x64xf32>, vector<16x64xf32> -> vector<16x64xf32>
    %57 = vector.broadcast %55 : vector<16x1xf32> to vector<16x64xf32>
    %58 = arith.divf %56, %57 : vector<16x64xf32>
    %59 = vector.extract_strided_slice %41 {offsets = [0, 64], sizes = [16, 64], strides = [1, 1]} : vector<16x384xf32> to vector<16x64xf32>
    %60 = vector.extract_strided_slice %41 {offsets = [0, 192], sizes = [16, 64], strides = [1, 1]} : vector<16x384xf32> to vector<16x64xf32>
    %61 = vector.extract_strided_slice %41 {offsets = [0, 320], sizes = [16, 64], strides = [1, 1]} : vector<16x384xf32> to vector<16x64xf32>
    %cst_28 = arith.constant dense<0.000000e+00> : vector<16x16xf32>
    %62 = tpu.matmul %59, %60, %cst_28 {dimension_numbers = #tpu.dot_dimension_numbers<[1], [1], [0], [0], [0, 0, 1, 0], [], []>} : vector<16x64xf32>, vector<16x64xf32>, vector<16x16xf32> -> vector<16x16xf32>
    %cst_29 = arith.constant 1.250000e-01 : f32
    %63 = vector.broadcast %cst_29 : f32 to vector<16x16xf32>
    %64 = arith.mulf %62, %63 : vector<16x16xf32>
    %65 = arith.addf %64, %8 : vector<16x16xf32>
    %cst_30 = arith.constant dense<0xFF800000> : vector<16xf32>
    %66 = vector.multi_reduction <maximumf>, %65, %cst_30 [1] : vector<16x16xf32> to vector<16xf32>
    %67 = vector.shape_cast %66 : vector<16xf32> to vector<16x1xf32>
    %68 = vector.broadcast %67 : vector<16x1xf32> to vector<16x16xf32>
    %69 = arith.subf %65, %68 : vector<16x16xf32>
    %70 = math.exp %69 : vector<16x16xf32>
    %cst_31 = arith.constant dense<0.000000e+00> : vector<16xf32>
    %71 = vector.multi_reduction <add>, %70, %cst_31 [1] : vector<16x16xf32> to vector<16xf32>
    %72 = vector.shape_cast %71 : vector<16xf32> to vector<16x1xf32>
    %cst_32 = arith.constant dense<0.000000e+00> : vector<16x64xf32>
    %73 = tpu.matmul %70, %61, %cst_32 {dimension_numbers = #tpu.dot_dimension_numbers<[1], [0], [0], [1], [0, 0, 1, 1], [], []>} : vector<16x16xf32>, vector<16x64xf32>, vector<16x64xf32> -> vector<16x64xf32>
    %74 = vector.broadcast %72 : vector<16x1xf32> to vector<16x64xf32>
    %75 = arith.divf %73, %74 : vector<16x64xf32>
    %76 = tpu.concatenate %58, %75 in 1 : vector<16x64xf32>, vector<16x64xf32> -> vector<16x128xf32>
    %c0_33 = arith.constant 0 : index
    %c0_34 = arith.constant 0 : index
    %c0_35 = arith.constant 0 : index
    %77 = vector.load %arg7[%c0_33, %c0_34, %c0_35] : memref<2x128x128xf32, #tpu.memory_space<vmem>>, vector<1x128x128xf32>
    %78 = vector.shape_cast %77 : vector<1x128x128xf32> to vector<128x128xf32>
    %cst_36 = arith.constant dense<0.000000e+00> : vector<16x128xf32>
    %79 = tpu.matmul %76, %78, %cst_36 {dimension_numbers = #tpu.dot_dimension_numbers<[1], [0], [0], [1], [0, 0, 1, 1], [], []>} : vector<16x128xf32>, vector<128x128xf32>, vector<16x128xf32> -> vector<16x128xf32>
    %80 = arith.addf %7, %79 : vector<16x128xf32>
    %c0_37 = arith.constant 0 : index
    %c0_38 = arith.constant 0 : index
    %c0_39 = arith.constant 0 : index
    %81 = vector.load %arg8[%c0_37, %c0_38, %c0_39] : memref<2x1x128xf32, #tpu.memory_space<vmem>>, vector<1x1x128xf32>
    %82 = vector.shape_cast %81 : vector<1x1x128xf32> to vector<1x128xf32>
    %83 = vector.broadcast %82 : vector<1x128xf32> to vector<16x128xf32>
    %84 = arith.addf %80, %83 : vector<16x128xf32>
    %c0_40 = arith.constant 0 : index
    %c0_41 = arith.constant 0 : index
    %c0_42 = arith.constant 0 : index
    %85 = vector.load %arg9[%c0_40, %c0_41, %c0_42] : memref<2x1x128xf32, #tpu.memory_space<vmem>>, vector<1x1x128xf32>
    %86 = vector.shape_cast %85 : vector<1x1x128xf32> to vector<1x128xf32>
    %c0_43 = arith.constant 0 : index
    %c0_44 = arith.constant 0 : index
    %c0_45 = arith.constant 0 : index
    %87 = vector.load %arg10[%c0_43, %c0_44, %c0_45] : memref<2x1x128xf32, #tpu.memory_space<vmem>>, vector<1x1x128xf32>
    %88 = vector.shape_cast %87 : vector<1x1x128xf32> to vector<1x128xf32>
    %cst_46 = arith.constant dense<0.000000e+00> : vector<16xf32>
    %89 = vector.multi_reduction <add>, %84, %cst_46 [1] : vector<16x128xf32> to vector<16xf32>
    %90 = vector.shape_cast %89 : vector<16xf32> to vector<16x1xf32>
    %cst_47 = arith.constant 1.280000e+02 : f32
    %91 = vector.broadcast %cst_47 : f32 to vector<16x1xf32>
    %92 = arith.divf %90, %91 : vector<16x1xf32>
    %93 = vector.broadcast %92 : vector<16x1xf32> to vector<16x128xf32>
    %94 = arith.subf %84, %93 : vector<16x128xf32>
    %95 = arith.mulf %94, %94 : vector<16x128xf32>
    %cst_48 = arith.constant dense<0.000000e+00> : vector<16xf32>
    %96 = vector.multi_reduction <add>, %95, %cst_48 [1] : vector<16x128xf32> to vector<16xf32>
    %97 = vector.shape_cast %96 : vector<16xf32> to vector<16x1xf32>
    %cst_49 = arith.constant 1.280000e+02 : f32
    %98 = vector.broadcast %cst_49 : f32 to vector<16x1xf32>
    %99 = arith.divf %97, %98 : vector<16x1xf32>
    %100 = vector.broadcast %92 : vector<16x1xf32> to vector<16x128xf32>
    %101 = arith.subf %84, %100 : vector<16x128xf32>
    %cst_50 = arith.constant 9.99999974E-6 : f32
    %102 = vector.broadcast %cst_50 : f32 to vector<16x1xf32>
    %103 = arith.addf %99, %102 : vector<16x1xf32>
    %104 = math.rsqrt %103 : vector<16x1xf32>
    %105 = vector.broadcast %104 : vector<16x1xf32> to vector<16x128xf32>
    %106 = arith.mulf %101, %105 : vector<16x128xf32>
    %107 = vector.broadcast %86 : vector<1x128xf32> to vector<16x128xf32>
    %108 = arith.mulf %106, %107 : vector<16x128xf32>
    %109 = vector.broadcast %88 : vector<1x128xf32> to vector<16x128xf32>
    %110 = arith.addf %108, %109 : vector<16x128xf32>
    %c0_51 = arith.constant 0 : index
    %c0_52 = arith.constant 0 : index
    %c0_53 = arith.constant 0 : index
    %111 = vector.load %arg11[%c0_51, %c0_52, %c0_53] : memref<2x128x256xf32, #tpu.memory_space<vmem>>, vector<1x128x256xf32>
    %112 = vector.shape_cast %111 : vector<1x128x256xf32> to vector<128x256xf32>
    %cst_54 = arith.constant dense<0.000000e+00> : vector<16x256xf32>
    %113 = tpu.matmul %110, %112, %cst_54 {dimension_numbers = #tpu.dot_dimension_numbers<[1], [0], [0], [1], [0, 0, 1, 1], [], []>} : vector<16x128xf32>, vector<128x256xf32>, vector<16x256xf32> -> vector<16x256xf32>
    %114 = vector.extract_strided_slice %113 {offsets = [0, 0], sizes = [16, 128], strides = [1, 1]} : vector<16x256xf32> to vector<16x128xf32>
    %115 = vector.extract_strided_slice %113 {offsets = [0, 128], sizes = [16, 128], strides = [1, 1]} : vector<16x256xf32> to vector<16x128xf32>
    %116 = arith.negf %114 : vector<16x128xf32>
    %117 = math.exp %116 : vector<16x128xf32>
    %cst_55 = arith.constant 1.000000e+00 : f32
    %118 = vector.broadcast %cst_55 : f32 to vector<16x128xf32>
    %119 = arith.addf %118, %117 : vector<16x128xf32>
    %120 = arith.divf %118, %119 : vector<16x128xf32>
    %121 = arith.mulf %114, %120 : vector<16x128xf32>
    %122 = arith.mulf %121, %115 : vector<16x128xf32>
    %c0_56 = arith.constant 0 : index
    %c0_57 = arith.constant 0 : index
    %c0_58 = arith.constant 0 : index
    %123 = vector.load %arg12[%c0_56, %c0_57, %c0_58] : memref<2x128x128xf32, #tpu.memory_space<vmem>>, vector<1x128x128xf32>
    %124 = vector.shape_cast %123 : vector<1x128x128xf32> to vector<128x128xf32>
    %cst_59 = arith.constant dense<0.000000e+00> : vector<16x128xf32>
    %125 = tpu.matmul %122, %124, %cst_59 {dimension_numbers = #tpu.dot_dimension_numbers<[1], [0], [0], [1], [0, 0, 1, 1], [], []>} : vector<16x128xf32>, vector<128x128xf32>, vector<16x128xf32> -> vector<16x128xf32>
    %126 = arith.addf %84, %125 : vector<16x128xf32>
    %c1 = arith.constant 1 : index
    %c0_60 = arith.constant 0 : index
    %c0_61 = arith.constant 0 : index
    %127 = vector.load %arg3[%c1, %c0_60, %c0_61] : memref<2x1x128xf32, #tpu.memory_space<vmem>>, vector<1x1x128xf32>
    %128 = vector.shape_cast %127 : vector<1x1x128xf32> to vector<1x128xf32>
    %c1_62 = arith.constant 1 : index
    %c0_63 = arith.constant 0 : index
    %c0_64 = arith.constant 0 : index
    %129 = vector.load %arg4[%c1_62, %c0_63, %c0_64] : memref<2x1x128xf32, #tpu.memory_space<vmem>>, vector<1x1x128xf32>
    %130 = vector.shape_cast %129 : vector<1x1x128xf32> to vector<1x128xf32>
    %cst_65 = arith.constant dense<0.000000e+00> : vector<16xf32>
    %131 = vector.multi_reduction <add>, %126, %cst_65 [1] : vector<16x128xf32> to vector<16xf32>
    %132 = vector.shape_cast %131 : vector<16xf32> to vector<16x1xf32>
    %cst_66 = arith.constant 1.280000e+02 : f32
    %133 = vector.broadcast %cst_66 : f32 to vector<16x1xf32>
    %134 = arith.divf %132, %133 : vector<16x1xf32>
    %135 = vector.broadcast %134 : vector<16x1xf32> to vector<16x128xf32>
    %136 = arith.subf %126, %135 : vector<16x128xf32>
    %137 = arith.mulf %136, %136 : vector<16x128xf32>
    %cst_67 = arith.constant dense<0.000000e+00> : vector<16xf32>
    %138 = vector.multi_reduction <add>, %137, %cst_67 [1] : vector<16x128xf32> to vector<16xf32>
    %139 = vector.shape_cast %138 : vector<16xf32> to vector<16x1xf32>
    %cst_68 = arith.constant 1.280000e+02 : f32
    %140 = vector.broadcast %cst_68 : f32 to vector<16x1xf32>
    %141 = arith.divf %139, %140 : vector<16x1xf32>
    %142 = vector.broadcast %134 : vector<16x1xf32> to vector<16x128xf32>
    %143 = arith.subf %126, %142 : vector<16x128xf32>
    %cst_69 = arith.constant 9.99999974E-6 : f32
    %144 = vector.broadcast %cst_69 : f32 to vector<16x1xf32>
    %145 = arith.addf %141, %144 : vector<16x1xf32>
    %146 = math.rsqrt %145 : vector<16x1xf32>
    %147 = vector.broadcast %146 : vector<16x1xf32> to vector<16x128xf32>
    %148 = arith.mulf %143, %147 : vector<16x128xf32>
    %149 = vector.broadcast %128 : vector<1x128xf32> to vector<16x128xf32>
    %150 = arith.mulf %148, %149 : vector<16x128xf32>
    %151 = vector.broadcast %130 : vector<1x128xf32> to vector<16x128xf32>
    %152 = arith.addf %150, %151 : vector<16x128xf32>
    %c1_70 = arith.constant 1 : index
    %c0_71 = arith.constant 0 : index
    %c0_72 = arith.constant 0 : index
    %153 = vector.load %arg5[%c1_70, %c0_71, %c0_72] : memref<2x128x384xf32, #tpu.memory_space<vmem>>, vector<1x128x384xf32>
    %154 = vector.shape_cast %153 : vector<1x128x384xf32> to vector<128x384xf32>
    %cst_73 = arith.constant dense<0.000000e+00> : vector<16x384xf32>
    %155 = tpu.matmul %152, %154, %cst_73 {dimension_numbers = #tpu.dot_dimension_numbers<[1], [0], [0], [1], [0, 0, 1, 1], [], []>} : vector<16x128xf32>, vector<128x384xf32>, vector<16x384xf32> -> vector<16x384xf32>
    %c1_74 = arith.constant 1 : index
    %c0_75 = arith.constant 0 : index
    %c0_76 = arith.constant 0 : index
    %156 = vector.load %arg6[%c1_74, %c0_75, %c0_76] : memref<2x1x384xf32, #tpu.memory_space<vmem>>, vector<1x1x384xf32>
    %157 = vector.shape_cast %156 : vector<1x1x384xf32> to vector<1x384xf32>
    %158 = vector.broadcast %157 : vector<1x384xf32> to vector<16x384xf32>
    %159 = arith.addf %155, %158 : vector<16x384xf32>
    %160 = vector.extract_strided_slice %159 {offsets = [0, 0], sizes = [16, 64], strides = [1, 1]} : vector<16x384xf32> to vector<16x64xf32>
    %161 = vector.extract_strided_slice %159 {offsets = [0, 128], sizes = [16, 64], strides = [1, 1]} : vector<16x384xf32> to vector<16x64xf32>
    %162 = vector.extract_strided_slice %159 {offsets = [0, 256], sizes = [16, 64], strides = [1, 1]} : vector<16x384xf32> to vector<16x64xf32>
    %cst_77 = arith.constant dense<0.000000e+00> : vector<16x16xf32>
    %163 = tpu.matmul %160, %161, %cst_77 {dimension_numbers = #tpu.dot_dimension_numbers<[1], [1], [0], [0], [0, 0, 1, 0], [], []>} : vector<16x64xf32>, vector<16x64xf32>, vector<16x16xf32> -> vector<16x16xf32>
    %cst_78 = arith.constant 1.250000e-01 : f32
    %164 = vector.broadcast %cst_78 : f32 to vector<16x16xf32>
    %165 = arith.mulf %163, %164 : vector<16x16xf32>
    %166 = arith.addf %165, %8 : vector<16x16xf32>
    %cst_79 = arith.constant dense<0xFF800000> : vector<16xf32>
    %167 = vector.multi_reduction <maximumf>, %166, %cst_79 [1] : vector<16x16xf32> to vector<16xf32>
    %168 = vector.shape_cast %167 : vector<16xf32> to vector<16x1xf32>
    %169 = vector.broadcast %168 : vector<16x1xf32> to vector<16x16xf32>
    %170 = arith.subf %166, %169 : vector<16x16xf32>
    %171 = math.exp %170 : vector<16x16xf32>
    %cst_80 = arith.constant dense<0.000000e+00> : vector<16xf32>
    %172 = vector.multi_reduction <add>, %171, %cst_80 [1] : vector<16x16xf32> to vector<16xf32>
    %173 = vector.shape_cast %172 : vector<16xf32> to vector<16x1xf32>
    %cst_81 = arith.constant dense<0.000000e+00> : vector<16x64xf32>
    %174 = tpu.matmul %171, %162, %cst_81 {dimension_numbers = #tpu.dot_dimension_numbers<[1], [0], [0], [1], [0, 0, 1, 1], [], []>} : vector<16x16xf32>, vector<16x64xf32>, vector<16x64xf32> -> vector<16x64xf32>
    %175 = vector.broadcast %173 : vector<16x1xf32> to vector<16x64xf32>
    %176 = arith.divf %174, %175 : vector<16x64xf32>
    %177 = vector.extract_strided_slice %159 {offsets = [0, 64], sizes = [16, 64], strides = [1, 1]} : vector<16x384xf32> to vector<16x64xf32>
    %178 = vector.extract_strided_slice %159 {offsets = [0, 192], sizes = [16, 64], strides = [1, 1]} : vector<16x384xf32> to vector<16x64xf32>
    %179 = vector.extract_strided_slice %159 {offsets = [0, 320], sizes = [16, 64], strides = [1, 1]} : vector<16x384xf32> to vector<16x64xf32>
    %cst_82 = arith.constant dense<0.000000e+00> : vector<16x16xf32>
    %180 = tpu.matmul %177, %178, %cst_82 {dimension_numbers = #tpu.dot_dimension_numbers<[1], [1], [0], [0], [0, 0, 1, 0], [], []>} : vector<16x64xf32>, vector<16x64xf32>, vector<16x16xf32> -> vector<16x16xf32>
    %cst_83 = arith.constant 1.250000e-01 : f32
    %181 = vector.broadcast %cst_83 : f32 to vector<16x16xf32>
    %182 = arith.mulf %180, %181 : vector<16x16xf32>
    %183 = arith.addf %182, %8 : vector<16x16xf32>
    %cst_84 = arith.constant dense<0xFF800000> : vector<16xf32>
    %184 = vector.multi_reduction <maximumf>, %183, %cst_84 [1] : vector<16x16xf32> to vector<16xf32>
    %185 = vector.shape_cast %184 : vector<16xf32> to vector<16x1xf32>
    %186 = vector.broadcast %185 : vector<16x1xf32> to vector<16x16xf32>
    %187 = arith.subf %183, %186 : vector<16x16xf32>
    %188 = math.exp %187 : vector<16x16xf32>
    %cst_85 = arith.constant dense<0.000000e+00> : vector<16xf32>
    %189 = vector.multi_reduction <add>, %188, %cst_85 [1] : vector<16x16xf32> to vector<16xf32>
    %190 = vector.shape_cast %189 : vector<16xf32> to vector<16x1xf32>
    %cst_86 = arith.constant dense<0.000000e+00> : vector<16x64xf32>
    %191 = tpu.matmul %188, %179, %cst_86 {dimension_numbers = #tpu.dot_dimension_numbers<[1], [0], [0], [1], [0, 0, 1, 1], [], []>} : vector<16x16xf32>, vector<16x64xf32>, vector<16x64xf32> -> vector<16x64xf32>
    %192 = vector.broadcast %190 : vector<16x1xf32> to vector<16x64xf32>
    %193 = arith.divf %191, %192 : vector<16x64xf32>
    %194 = tpu.concatenate %176, %193 in 1 : vector<16x64xf32>, vector<16x64xf32> -> vector<16x128xf32>
    %c1_87 = arith.constant 1 : index
    %c0_88 = arith.constant 0 : index
    %c0_89 = arith.constant 0 : index
    %195 = vector.load %arg7[%c1_87, %c0_88, %c0_89] : memref<2x128x128xf32, #tpu.memory_space<vmem>>, vector<1x128x128xf32>
    %196 = vector.shape_cast %195 : vector<1x128x128xf32> to vector<128x128xf32>
    %cst_90 = arith.constant dense<0.000000e+00> : vector<16x128xf32>
    %197 = tpu.matmul %194, %196, %cst_90 {dimension_numbers = #tpu.dot_dimension_numbers<[1], [0], [0], [1], [0, 0, 1, 1], [], []>} : vector<16x128xf32>, vector<128x128xf32>, vector<16x128xf32> -> vector<16x128xf32>
    %198 = arith.addf %126, %197 : vector<16x128xf32>
    %c1_91 = arith.constant 1 : index
    %c0_92 = arith.constant 0 : index
    %c0_93 = arith.constant 0 : index
    %199 = vector.load %arg8[%c1_91, %c0_92, %c0_93] : memref<2x1x128xf32, #tpu.memory_space<vmem>>, vector<1x1x128xf32>
    %200 = vector.shape_cast %199 : vector<1x1x128xf32> to vector<1x128xf32>
    %201 = vector.broadcast %200 : vector<1x128xf32> to vector<16x128xf32>
    %202 = arith.addf %198, %201 : vector<16x128xf32>
    %c1_94 = arith.constant 1 : index
    %c0_95 = arith.constant 0 : index
    %c0_96 = arith.constant 0 : index
    %203 = vector.load %arg9[%c1_94, %c0_95, %c0_96] : memref<2x1x128xf32, #tpu.memory_space<vmem>>, vector<1x1x128xf32>
    %204 = vector.shape_cast %203 : vector<1x1x128xf32> to vector<1x128xf32>
    %c1_97 = arith.constant 1 : index
    %c0_98 = arith.constant 0 : index
    %c0_99 = arith.constant 0 : index
    %205 = vector.load %arg10[%c1_97, %c0_98, %c0_99] : memref<2x1x128xf32, #tpu.memory_space<vmem>>, vector<1x1x128xf32>
    %206 = vector.shape_cast %205 : vector<1x1x128xf32> to vector<1x128xf32>
    %cst_100 = arith.constant dense<0.000000e+00> : vector<16xf32>
    %207 = vector.multi_reduction <add>, %202, %cst_100 [1] : vector<16x128xf32> to vector<16xf32>
    %208 = vector.shape_cast %207 : vector<16xf32> to vector<16x1xf32>
    %cst_101 = arith.constant 1.280000e+02 : f32
    %209 = vector.broadcast %cst_101 : f32 to vector<16x1xf32>
    %210 = arith.divf %208, %209 : vector<16x1xf32>
    %211 = vector.broadcast %210 : vector<16x1xf32> to vector<16x128xf32>
    %212 = arith.subf %202, %211 : vector<16x128xf32>
    %213 = arith.mulf %212, %212 : vector<16x128xf32>
    %cst_102 = arith.constant dense<0.000000e+00> : vector<16xf32>
    %214 = vector.multi_reduction <add>, %213, %cst_102 [1] : vector<16x128xf32> to vector<16xf32>
    %215 = vector.shape_cast %214 : vector<16xf32> to vector<16x1xf32>
    %cst_103 = arith.constant 1.280000e+02 : f32
    %216 = vector.broadcast %cst_103 : f32 to vector<16x1xf32>
    %217 = arith.divf %215, %216 : vector<16x1xf32>
    %218 = vector.broadcast %210 : vector<16x1xf32> to vector<16x128xf32>
    %219 = arith.subf %202, %218 : vector<16x128xf32>
    %cst_104 = arith.constant 9.99999974E-6 : f32
    %220 = vector.broadcast %cst_104 : f32 to vector<16x1xf32>
    %221 = arith.addf %217, %220 : vector<16x1xf32>
    %222 = math.rsqrt %221 : vector<16x1xf32>
    %223 = vector.broadcast %222 : vector<16x1xf32> to vector<16x128xf32>
    %224 = arith.mulf %219, %223 : vector<16x128xf32>
    %225 = vector.broadcast %204 : vector<1x128xf32> to vector<16x128xf32>
    %226 = arith.mulf %224, %225 : vector<16x128xf32>
    %227 = vector.broadcast %206 : vector<1x128xf32> to vector<16x128xf32>
    %228 = arith.addf %226, %227 : vector<16x128xf32>
    %c1_105 = arith.constant 1 : index
    %c0_106 = arith.constant 0 : index
    %c0_107 = arith.constant 0 : index
    %229 = vector.load %arg11[%c1_105, %c0_106, %c0_107] : memref<2x128x256xf32, #tpu.memory_space<vmem>>, vector<1x128x256xf32>
    %230 = vector.shape_cast %229 : vector<1x128x256xf32> to vector<128x256xf32>
    %cst_108 = arith.constant dense<0.000000e+00> : vector<16x256xf32>
    %231 = tpu.matmul %228, %230, %cst_108 {dimension_numbers = #tpu.dot_dimension_numbers<[1], [0], [0], [1], [0, 0, 1, 1], [], []>} : vector<16x128xf32>, vector<128x256xf32>, vector<16x256xf32> -> vector<16x256xf32>
    %232 = vector.extract_strided_slice %231 {offsets = [0, 0], sizes = [16, 128], strides = [1, 1]} : vector<16x256xf32> to vector<16x128xf32>
    %233 = vector.extract_strided_slice %231 {offsets = [0, 128], sizes = [16, 128], strides = [1, 1]} : vector<16x256xf32> to vector<16x128xf32>
    %234 = arith.negf %232 : vector<16x128xf32>
    %235 = math.exp %234 : vector<16x128xf32>
    %cst_109 = arith.constant 1.000000e+00 : f32
    %236 = vector.broadcast %cst_109 : f32 to vector<16x128xf32>
    %237 = arith.addf %236, %235 : vector<16x128xf32>
    %238 = arith.divf %236, %237 : vector<16x128xf32>
    %239 = arith.mulf %232, %238 : vector<16x128xf32>
    %240 = arith.mulf %239, %233 : vector<16x128xf32>
    %c1_110 = arith.constant 1 : index
    %c0_111 = arith.constant 0 : index
    %c0_112 = arith.constant 0 : index
    %241 = vector.load %arg12[%c1_110, %c0_111, %c0_112] : memref<2x128x128xf32, #tpu.memory_space<vmem>>, vector<1x128x128xf32>
    %242 = vector.shape_cast %241 : vector<1x128x128xf32> to vector<128x128xf32>
    %cst_113 = arith.constant dense<0.000000e+00> : vector<16x128xf32>
    %243 = tpu.matmul %240, %242, %cst_113 {dimension_numbers = #tpu.dot_dimension_numbers<[1], [0], [0], [1], [0, 0, 1, 1], [], []>} : vector<16x128xf32>, vector<128x128xf32>, vector<16x128xf32> -> vector<16x128xf32>
    %244 = arith.addf %202, %243 : vector<16x128xf32>
    %c0_114 = arith.constant 0 : index
    %c0_115 = arith.constant 0 : index
    %245 = vector.load %arg13[%c0_114, %c0_115] : memref<1x128xf32, #tpu.memory_space<vmem>>, vector<1x128xf32>
    %c0_116 = arith.constant 0 : index
    %c0_117 = arith.constant 0 : index
    %246 = vector.load %arg14[%c0_116, %c0_117] : memref<1x128xf32, #tpu.memory_space<vmem>>, vector<1x128xf32>
    %cst_118 = arith.constant dense<0.000000e+00> : vector<16xf32>
    %247 = vector.multi_reduction <add>, %244, %cst_118 [1] : vector<16x128xf32> to vector<16xf32>
    %248 = vector.shape_cast %247 : vector<16xf32> to vector<16x1xf32>
    %cst_119 = arith.constant 1.280000e+02 : f32
    %249 = vector.broadcast %cst_119 : f32 to vector<16x1xf32>
    %250 = arith.divf %248, %249 : vector<16x1xf32>
    %251 = vector.broadcast %250 : vector<16x1xf32> to vector<16x128xf32>
    %252 = arith.subf %244, %251 : vector<16x128xf32>
    %253 = arith.mulf %252, %252 : vector<16x128xf32>
    %cst_120 = arith.constant dense<0.000000e+00> : vector<16xf32>
    %254 = vector.multi_reduction <add>, %253, %cst_120 [1] : vector<16x128xf32> to vector<16xf32>
    %255 = vector.shape_cast %254 : vector<16xf32> to vector<16x1xf32>
    %cst_121 = arith.constant 1.280000e+02 : f32
    %256 = vector.broadcast %cst_121 : f32 to vector<16x1xf32>
    %257 = arith.divf %255, %256 : vector<16x1xf32>
    %258 = vector.broadcast %250 : vector<16x1xf32> to vector<16x128xf32>
    %259 = arith.subf %244, %258 : vector<16x128xf32>
    %cst_122 = arith.constant 9.99999974E-6 : f32
    %260 = vector.broadcast %cst_122 : f32 to vector<16x1xf32>
    %261 = arith.addf %257, %260 : vector<16x1xf32>
    %262 = math.rsqrt %261 : vector<16x1xf32>
    %263 = vector.broadcast %262 : vector<16x1xf32> to vector<16x128xf32>
    %264 = arith.mulf %259, %263 : vector<16x128xf32>
    %265 = vector.broadcast %245 : vector<1x128xf32> to vector<16x128xf32>
    %266 = arith.mulf %264, %265 : vector<16x128xf32>
    %267 = vector.broadcast %246 : vector<1x128xf32> to vector<16x128xf32>
    %268 = arith.addf %266, %267 : vector<16x128xf32>
    %c0_123 = arith.constant 0 : index
    %c0_124 = arith.constant 0 : index
    %269 = vector.load %arg15[%c0_123, %c0_124] : memref<16x128xf32, #tpu.memory_space<vmem>>, vector<16x128xf32>
    tpu.vector_store %arg15[%c0_123, %c0_124], %268 {strides = array<i32>} : memref<16x128xf32, #tpu.memory_space<vmem>>, vector<16x128xf32>,
    return
  }
}

</mosaic_0001>

<bundles_post_ra>
// kernel: tpu_custom_call.1
= control target key start
LH: loop header
LB: loop body
LE: loop exit
PB: predicated region body
PF: predicated region fallthrough
CT: control target
= control target key end

     0   :  { %20 = vsyncpa [#allocation3], 0  ;;  %s4367_s0 = inlined_call_operand.hbm [shape: s32[16,1], index: 0, kind: input, shape index: {}]   ;;  %s4368_s1 = inlined_call_operand.hbm [shape: f32[16,16], index: 1, kind: input, shape index: {}]   ;;  %s4369_s2 = inlined_call_operand.hbm [shape: f32[64,128], index: 2, kind: input, shape index: {}]   ;;  %s4370_s3 = inlined_call_operand.hbm [shape: f32[2,1,128], index: 3, kind: input, shape index: {}]   ;;  %s4371_s4 = inlined_call_operand.hbm [shape: f32[2,1,128], index: 4, kind: input, shape index: {}]   ;;  %s4372_s5 = inlined_call_operand.hbm [shape: f32[2,128,384], index: 5, kind: input, shape index: {}]   ;;  %s4373_s6 = inlined_call_operand.hbm [shape: f32[2,1,384], index: 6, kind: input, shape index: {}]   ;;  %s4374_s7 = inlined_call_operand.hbm [shape: f32[2,128,128], index: 7, kind: input, shape index: {}]   ;;  %s4375_s8 = inlined_call_operand.hbm [shape: f32[2,1,128], index: 8, kind: input, shape index: {}]   ;;  %s4376_s9 = inlined_call_operand.hbm [shape: f32[2,1,128], index: 9, kind: input, shape index: {}]   ;;  %s4377_s10 = inlined_call_operand.hbm [shape: f32[2,1,128], index: 10, kind: input, shape index: {}]   ;;  %s4378_s11 = inlined_call_operand.hbm [shape: f32[2,128,256], index: 11, kind: input, shape index: {}]   ;;  %s4379_s12 = inlined_call_operand.hbm [shape: f32[2,128,128], index: 12, kind: input, shape index: {}]   ;;  %s4380_s13 = inlined_call_operand.hbm [shape: f32[1,128], index: 13, kind: input, shape index: {}]   ;;  %s4381_s14 = inlined_call_operand.hbm [shape: f32[1,128], index: 14, kind: input, shape index: {}]   ;;  %s4382_s15 = inlined_call_operand.hbm [shape: f32[16,128], index: 15, kind: output, shape index: {}]  }
   0x1   :  { %21 = vsyncpa [#allocation6], 0 }
   0x2   :  { %22 = vsyncpa [#allocation9], 0 }
   0x3   :  { %23 = vsyncpa [#allocation12], 0 }
   0x4   :  { %24 = vsyncpa [#allocation15], 0 }
   0x5   :  { %25 = vsyncpa [#allocation18], 0 }
   0x6   :  { %26 = vsyncpa [#allocation21], 0 }
   0x7   :  { %27 = vsyncpa [#allocation24], 0 }
   0x8   :  { %28 = vsyncpa [#allocation4], 0  ;;  %s3842_s18 = smov [#allocation5]   ;;  %s3843_s20 = smov [#allocation8]  }
   0x9   :  { %s46_s19 = sshll.u32 %s3842_s18, 4  ;;  %s70_s21 = sshll.u32 %s3843_s20, 4  ;;  %s47_s19 = int_to_ptr.vmem [resolvable:$true] %s46_s19  ;;  %s3950_s21 = int_to_ptr.vmem [resolvable:$true] %s70_s21 }
   0xa   :  { %s3472_s24 = scalar_lea.hbm %s4368_s1, 256 }
   0xb   :  { %p3473_p0 = scmp.ne.s32.totalorder %s4368_s1, %s3472_s24  ;;  %p3476_p1 = scmp.lt.u32.totalorder %s3472_s24, %s4368_s1 }
   0xd   :  { %p3478_p2 = pnand %p3476_p1, %p3473_p0 }
   0xf   :  { %3481 = shalt.err (!%p3478_p2)
}
  0x10   :  { %s3482_s29 = scalar_lea.vmem %s47_s19, 256  ;;  %p3487_p4 = scmp.lt.s32.totalorder %s47_s19, %s47_s19 }
  0x11   :  { %p3483_p3 = scmp.ne.s32.totalorder %s47_s19, %s3482_s29  ;;  %p3488_p5 = scmp.lt.s32.totalorder %s3482_s29, %s3482_s29 }
  0x13   :  { %p3489_p6 = por %p3488_p5, %p3487_p4 }
  0x15   :  { %p3490_p7 = pnand %p3489_p6, %p3483_p3 }
  0x17   :  { %3493 = shalt.err (!%p3490_p7)
}
  0x18   :  { %s4383_s30 = smov 128   ;;  %s3845_s16 = smov 8  }
  0x19   :  { %52 = dma.hbm_to_vmem [thread:$0]  %s4368_s1, 256, %s47_s19, [#allocation6], %s4383_s30, %s4383_s30, %s3845_s16  }
  0x1a   :  { %s3494_s23 = scalar_lea.hbm %s4370_s3, 32 }
  0x1b   :  { %p3495_p8 = scmp.ne.s32.totalorder %s4370_s3, %s3494_s23  ;;  %p3498_p9 = scmp.lt.u32.totalorder %s3494_s23, %s4370_s3 }
  0x1d   :  { %p3500_p10 = pnand %p3498_p9, %p3495_p8 }
  0x1f   :  { %3503 = shalt.err (!%p3500_p10)
}
  0x20   :  { %s3504_s28 = scalar_lea.vmem %s3950_s21, 32  ;;  %p3509_p12 = scmp.lt.s32.totalorder %s3950_s21, %s3950_s21 }
  0x21   :  { %p3505_p11 = scmp.ne.s32.totalorder %s3950_s21, %s3504_s28  ;;  %p3510_p13 = scmp.lt.s32.totalorder %s3504_s28, %s3504_s28 }
  0x23   :  { %p3511_p0 = por %p3510_p13, %p3509_p12 }
  0x25   :  { %p3512_p1 = pnand %p3511_p0, %p3505_p11 }
  0x27   :  { %3515 = shalt.err (!%p3512_p1)
}
  0x28   :  { %s4385_s1 = smov 16   ;;  %s4387_s19 = smov 1  }
  0x29   :  { %76 = dma.hbm_to_vmem [thread:$0]  %s4370_s3, 32, %s3950_s21, [#allocation9], %s4385_s1, %s4385_s1, %s4387_s19  }
  0x2a   :  { %s3848_s18 = smov [#allocation11]   ;;  %s3516_s24 = scalar_lea.hbm %s4372_s5, 12288 }
  0x2b   :  { %s94_s20 = sshll.u32 %s3848_s18, 4  ;;  %p3517_p2 = scmp.ne.s32.totalorder %s4372_s5, %s3516_s24  ;;  %s95_s20 = int_to_ptr.vmem [resolvable:$true] %s94_s20 }
  0x2c   :  { %p3520_p3 = scmp.lt.u32.totalorder %s3516_s24, %s4372_s5 }
  0x2e   :  { %p3522_p4 = pnand %p3520_p3, %p3517_p2 }
  0x30   :  { %3525 = shalt.err (!%p3522_p4)
}
  0x31   :  { %s3526_s30 = scalar_lea.vmem %s95_s20, 12288  ;;  %p3531_p6 = scmp.lt.s32.totalorder %s95_s20, %s95_s20 }
  0x32   :  { %p3527_p5 = scmp.ne.s32.totalorder %s95_s20, %s3526_s30  ;;  %p3532_p7 = scmp.lt.s32.totalorder %s3526_s30, %s3526_s30 }
  0x34   :  { %p3533_p8 = por %p3532_p7, %p3531_p6 }
  0x36   :  { %p3534_p9 = pnand %p3533_p8, %p3527_p5 }
  0x38   :  { %3537 = shalt.err (!%p3534_p9)
}
  0x39   :  { %s3849_s3 = smov 384   ;;  %s3850_s21 = smov 24  }
  0x3a   :  { %100 = dma.hbm_to_vmem [thread:$0]  %s4372_s5, 12288, %s95_s20, [#allocation12], %s3849_s3, %s3849_s3, %s3850_s21  }
  0x3b   :  { %s3851_s18 = smov [#allocation14]   ;;  %s3852_s23 = smov [#allocation17]  }
  0x3c   :  { %s118_s22 = sshll.u32 %s3851_s18, 4  ;;  %s142_s24 = sshll.u32 %s3852_s23, 4  ;;  %s119_s22 = int_to_ptr.vmem [resolvable:$true] %s118_s22  ;;  %s143_s24 = int_to_ptr.vmem [resolvable:$true] %s142_s24 }
  0x3d   :  { %s3538_s27 = scalar_lea.hbm %s4374_s7, 4096 }
  0x3e   :  { %p3539_p10 = scmp.ne.s32.totalorder %s4374_s7, %s3538_s27  ;;  %p3542_p11 = scmp.lt.u32.totalorder %s3538_s27, %s4374_s7 }
  0x40   :  { %p3544_p12 = pnand %p3542_p11, %p3539_p10 }
  0x42   :  { %3547 = shalt.err (!%p3544_p12)
}
  0x43   :  { %s3548_s5 = scalar_lea.vmem %s119_s22, 4096  ;;  %p3553_p0 = scmp.lt.s32.totalorder %s119_s22, %s119_s22 }
  0x44   :  { %p3549_p13 = scmp.ne.s32.totalorder %s119_s22, %s3548_s5  ;;  %p3554_p1 = scmp.lt.s32.totalorder %s3548_s5, %s3548_s5 }
  0x46   :  { %p3555_p2 = por %p3554_p1, %p3553_p0 }
  0x48   :  { %p3556_p3 = pnand %p3555_p2, %p3549_p13 }
  0x4a   :  { %3559 = shalt.err (!%p3556_p3)
}
  0x4b   :  { %s4389_s20 = smov 128   ;;  %s3560_s19 = scalar_lea.hbm %s4376_s9, 32 }
  0x4c   :  { %124 = dma.hbm_to_vmem [thread:$0]  %s4374_s7, 4096, %s119_s22, [#allocation15], %s4389_s20, %s4389_s20, %s3845_s16  }
  0x4d   :  { %p3561_p4 = scmp.ne.s32.totalorder %s4376_s9, %s3560_s19  ;;  %p3564_p5 = scmp.lt.u32.totalorder %s3560_s19, %s4376_s9 }
  0x4f   :  { %p3566_p6 = pnand %p3564_p5, %p3561_p4 }
  0x51   :  { %3569 = shalt.err (!%p3566_p6)
}
  0x52   :  { %s3570_s26 = scalar_lea.vmem %s143_s24, 32  ;;  %p3575_p8 = scmp.lt.s32.totalorder %s143_s24, %s143_s24 }
  0x53   :  { %p3571_p7 = scmp.ne.s32.totalorder %s143_s24, %s3570_s26  ;;  %p3576_p9 = scmp.lt.s32.totalorder %s3570_s26, %s3570_s26 }
  0x55   :  { %p3577_p10 = por %p3576_p9, %p3575_p8 }
  0x57   :  { %p3578_p11 = pnand %p3577_p10, %p3571_p7 }
  0x59   :  { %3581 = shalt.err (!%p3578_p11)
}
  0x5a   :  { %s4390_s7 = smov 1   ;;  %s4391_s22 = smov 16  }
  0x5b   :  { %148 = dma.hbm_to_vmem [thread:$0]  %s4376_s9, 32, %s143_s24, [#allocation18], %s4391_s22, %s4391_s22, %s4390_s7  }
  0x5c   :  { %s3853_s30 = smov [#allocation20]   ;;  %s3582_s29 = scalar_lea.hbm %s4378_s11, 8192 }
  0x5d   :  { %s166_s5 = sshll.u32 %s3853_s30, 4  ;;  %p3583_p12 = scmp.ne.s32.totalorder %s4378_s11, %s3582_s29  ;;  %s167_s5 = int_to_ptr.vmem [resolvable:$true] %s166_s5 }
  0x5e   :  { %p3586_p13 = scmp.lt.u32.totalorder %s3582_s29, %s4378_s11 }
  0x60   :  { %p3588_p0 = pnand %p3586_p13, %p3583_p12 }
  0x62   :  { %3591 = shalt.err (!%p3588_p0)
}
  0x63   :  { %s3592_s23 = scalar_lea.vmem %s167_s5, 8192  ;;  %p3597_p2 = scmp.lt.s32.totalorder %s167_s5, %s167_s5 }
  0x64   :  { %p3593_p1 = scmp.ne.s32.totalorder %s167_s5, %s3592_s23  ;;  %p3598_p3 = scmp.lt.s32.totalorder %s3592_s23, %s3592_s23 }
  0x66   :  { %p3599_p4 = por %p3598_p3, %p3597_p2 }
  0x68   :  { %p3600_p5 = pnand %p3599_p4, %p3593_p1 }
  0x6a   :  { %3603 = shalt.err (!%p3600_p5)
}
  0x6b   :  { %s3854_s9 = smov 256   ;;  %s3855_s26 = smov [#allocation23]  }
  0x6c   :  { %172 = dma.hbm_to_vmem [thread:$0]  %s4378_s11, 8192, %s167_s5, [#allocation21], %s3854_s9, %s3854_s9, %s4391_s22  }
  0x6d   :  { %s191_s27 = sshll.u32 %s3855_s26, 4  ;;  %s3856_s28 = smov [#allocation2]   ;;  %s192_s27 = int_to_ptr.vmem [resolvable:$true] %s191_s27 }
  0x6e   :  { %s34_s30 = sshll.u32 %s3856_s28, 4  ;;  %s3604_s29 = scalar_lea.hbm %s4380_s13, 16  ;;  %s35_s30 = int_to_ptr.vmem [resolvable:$true] %s34_s30 }
  0x6f   :  { %p3605_p6 = scmp.ne.s32.totalorder %s4380_s13, %s3604_s29  ;;  %p3608_p7 = scmp.lt.u32.totalorder %s3604_s29, %s4380_s13 }
  0x71   :  { %p3610_p8 = pnand %p3608_p7, %p3605_p6 }
  0x73   :  { %3613 = shalt.err (!%p3610_p8)
}
  0x74   :  { %s3614_s11 = scalar_lea.vmem %s192_s27, 16  ;;  %s3618_s5 = scalar_lea.vmem %s192_s27, 32 }
  0x75   :  { %p3615_p9 = scmp.ne.s32.totalorder %s192_s27, %s3614_s11  ;;  %p3619_p10 = scmp.lt.s32.totalorder %s192_s27, %s192_s27 }
  0x76   :  { %p3620_p11 = scmp.lt.s32.totalorder %s3618_s5, %s3614_s11 }
  0x78   :  { %p3621_p12 = por %p3620_p11, %p3619_p10 }
  0x7a   :  { %p3622_p13 = pnand %p3621_p12, %p3615_p9 }
  0x7c   :  { %3625 = shalt.err (!%p3622_p13)
}
  0x7d   :  { %194 = dma.hbm_to_vmem [thread:$0]  %s4380_s13, 16, %s192_s27, [#allocation24]  }
  0x7e   :  { %s3626_s26 = scalar_lea.hbm %s4367_s0, 256 }
  0x7f   :  { %p3627_p0 = scmp.ne.s32.totalorder %s4367_s0, %s3626_s26  ;;  %p3630_p1 = scmp.lt.u32.totalorder %s3626_s26, %s4367_s0 }
  0x81   :  { %p3632_p2 = pnand %p3630_p1, %p3627_p0 }
  0x83   :  { %3635 = shalt.err (!%p3632_p2)
}
  0x84   :  { %s3636_s1 = scalar_lea.vmem %s35_s30, 256  ;;  %p3641_p4 = scmp.lt.s32.totalorder %s35_s30, %s35_s30 }
  0x85   :  { %p3637_p3 = scmp.ne.s32.totalorder %s35_s30, %s3636_s1  ;;  %p3642_p5 = scmp.lt.s32.totalorder %s3636_s1, %s3636_s1 }
  0x87   :  { %p3643_p6 = por %p3642_p5, %p3641_p4 }
  0x89   :  { %p3644_p7 = pnand %p3643_p6, %p3637_p3 }
  0x8b   :  { %3647 = shalt.err (!%p3644_p7)
}
  0x8c   :  { %40 = dma.hbm_to_vmem [thread:$0]  %s4367_s0, 256, %s35_s30, [#allocation3], %s4389_s20, %s4389_s20, %s3845_s16  }
  0x8d   :  { %s3857_s19 = smov [#allocation7]   ;;  %s3858_s18 = smov [#allocation10]  }
  0x8e   :  { %s58_s17 = sshll.u32 %s3857_s19, 4  ;;  %s82_s11 = sshll.u32 %s3858_s18, 4  ;;  %s59_s17 = int_to_ptr.vmem [resolvable:$true] %s58_s17  ;;  %s83_s11 = int_to_ptr.vmem [resolvable:$true] %s82_s11 }
  0x8f   :  { %s3648_s9 = scalar_lea.hbm %s4369_s2, 1024 }
  0x90   :  { %p3649_p8 = scmp.ne.s32.totalorder %s4369_s2, %s3648_s9  ;;  %p3652_p9 = scmp.lt.u32.totalorder %s3648_s9, %s4369_s2 }
  0x92   :  { %p3654_p10 = pnand %p3652_p9, %p3649_p8 }
  0x94   :  { %3657 = shalt.err (!%p3654_p10)
}
  0x95   :  { %s3658_s0 = scalar_lea.vmem %s59_s17, 1024  ;;  %p3663_p12 = scmp.lt.s32.totalorder %s59_s17, %s59_s17 }
  0x96   :  { %p3659_p11 = scmp.ne.s32.totalorder %s59_s17, %s3658_s0  ;;  %p3664_p13 = scmp.lt.s32.totalorder %s3658_s0, %s3658_s0 }
  0x98   :  { %p3665_p0 = por %p3664_p13, %p3663_p12 }
  0x9a   :  { %p3666_p1 = pnand %p3665_p0, %p3659_p11 }
  0x9c   :  { %3669 = shalt.err (!%p3666_p1)
}
  0x9d   :  { %64 = dma.hbm_to_vmem [thread:$0]  %s4369_s2, 1024, %s59_s17, [#allocation6], %s4389_s20, %s4389_s20, %s3845_s16  }
  0x9e   :  { %s3670_s1 = scalar_lea.hbm %s4371_s4, 32 }
  0x9f   :  { %p3671_p2 = scmp.ne.s32.totalorder %s4371_s4, %s3670_s1  ;;  %p3674_p3 = scmp.lt.u32.totalorder %s3670_s1, %s4371_s4 }
  0xa1   :  { %p3676_p4 = pnand %p3674_p3, %p3671_p2 }
  0xa3   :  { %3679 = shalt.err (!%p3676_p4)
}
  0xa4   :  { %s3680_s5 = scalar_lea.vmem %s83_s11, 32  ;;  %p3685_p6 = scmp.lt.s32.totalorder %s83_s11, %s83_s11 }
  0xa5   :  { %p3681_p5 = scmp.ne.s32.totalorder %s83_s11, %s3680_s5  ;;  %p3686_p7 = scmp.lt.s32.totalorder %s3680_s5, %s3680_s5 }
  0xa7   :  { %p3687_p8 = por %p3686_p7, %p3685_p6 }
  0xa9   :  { %p3688_p9 = pnand %p3687_p8, %p3681_p5 }
  0xab   :  { %3691 = shalt.err (!%p3688_p9)
}
  0xac   :  { %88 = dma.hbm_to_vmem [thread:$0]  %s4371_s4, 32, %s83_s11, [#allocation9], %s4391_s22, %s4391_s22, %s4390_s7  }
  0xad   :  { %s3859_s23 = smov [#allocation13]   ;;  %s3692_s26 = scalar_lea.hbm %s4373_s6, 96 }
  0xae   :  { %s106_s9 = sshll.u32 %s3859_s23, 4  ;;  %p3693_p10 = scmp.ne.s32.totalorder %s4373_s6, %s3692_s26  ;;  %s107_s9 = int_to_ptr.vmem [resolvable:$true] %s106_s9 }
  0xaf   :  { %p3696_p11 = scmp.lt.u32.totalorder %s3692_s26, %s4373_s6 }
  0xb1   :  { %p3698_p12 = pnand %p3696_p11, %p3693_p10 }
  0xb3   :  { %3701 = shalt.err (!%p3698_p12)
}
  0xb4   :  { %s3702_s21 = scalar_lea.vmem %s107_s9, 96  ;;  %p3707_p0 = scmp.lt.s32.totalorder %s107_s9, %s107_s9 }
  0xb5   :  { %p3703_p13 = scmp.ne.s32.totalorder %s107_s9, %s3702_s21  ;;  %p3708_p1 = scmp.lt.s32.totalorder %s3702_s21, %s3702_s21 }
  0xb7   :  { %p3709_p2 = por %p3708_p1, %p3707_p0 }
  0xb9   :  { %p3710_p3 = pnand %p3709_p2, %p3703_p13 }
  0xbb   :  { %3713 = shalt.err (!%p3710_p3)
}
  0xbc   :  { %s3860_s4 = smov 48   ;;  %s3861_s11 = smov 3  }
  0xbd   :  { %112 = dma.hbm_to_vmem [thread:$0]  %s4373_s6, 96, %s107_s9, [#allocation12], %s3860_s4, %s3860_s4, %s3861_s11  }
  0xbe   :  { %s3862_s13 = smov [#allocation16]   ;;  %s3863_s19 = smov [#allocation19]  }
  0xbf   :  { %s130_s27 = sshll.u32 %s3862_s13, 4  ;;  %s154_s18 = sshll.u32 %s3863_s19, 4  ;;  %s131_s27 = int_to_ptr.vmem [resolvable:$true] %s130_s27  ;;  %s4111_s18 = int_to_ptr.vmem [resolvable:$true] %s154_s18 }
  0xc0   :  { %s3714_s17 = scalar_lea.hbm %s4375_s8, 32 }
  0xc1   :  { %p3715_p4 = scmp.ne.s32.totalorder %s4375_s8, %s3714_s17  ;;  %p3718_p5 = scmp.lt.u32.totalorder %s3714_s17, %s4375_s8 }
  0xc3   :  { %p3720_p6 = pnand %p3718_p5, %p3715_p4 }
  0xc5   :  { %3723 = shalt.err (!%p3720_p6)
}
  0xc6   :  { %s3724_s6 = scalar_lea.vmem %s131_s27, 32  ;;  %p3729_p8 = scmp.lt.s32.totalorder %s131_s27, %s131_s27 }
  0xc7   :  { %p3725_p7 = scmp.ne.s32.totalorder %s131_s27, %s3724_s6  ;;  %p3730_p9 = scmp.lt.s32.totalorder %s3724_s6, %s3724_s6 }
  0xc9   :  { %p3731_p10 = por %p3730_p9, %p3729_p8 }
  0xcb   :  { %p3732_p11 = pnand %p3731_p10, %p3725_p7 }
  0xcd   :  { %3735 = shalt.err (!%p3732_p11)
}
  0xce   :  { %136 = dma.hbm_to_vmem [thread:$0]  %s4375_s8, 32, %s131_s27, [#allocation15], %s4391_s22, %s4391_s22, %s4390_s7  }
  0xcf   :  { %s3736_s3 = scalar_lea.hbm %s4377_s10, 32 }
  0xd0   :  { %p3737_p12 = scmp.ne.s32.totalorder %s4377_s10, %s3736_s3  ;;  %p3740_p13 = scmp.lt.u32.totalorder %s3736_s3, %s4377_s10 }
  0xd2   :  { %p3742_p0 = pnand %p3740_p13, %p3737_p12 }
  0xd4   :  { %3745 = shalt.err (!%p3742_p0)
}
  0xd5   :  { %s3746_s1 = scalar_lea.vmem %s4111_s18, 32  ;;  %p3751_p2 = scmp.lt.s32.totalorder %s4111_s18, %s4111_s18 }
  0xd6   :  { %p3747_p1 = scmp.ne.s32.totalorder %s4111_s18, %s3746_s1  ;;  %p3752_p3 = scmp.lt.s32.totalorder %s3746_s1, %s3746_s1 }
  0xd8   :  { %p3753_p4 = por %p3752_p3, %p3751_p2 }
  0xda   :  { %p3754_p5 = pnand %p3753_p4, %p3747_p1 }
  0xdc   :  { %3757 = shalt.err (!%p3754_p5)
}
  0xdd   :  { %160 = dma.hbm_to_vmem [thread:$0]  %s4377_s10, 32, %s4111_s18, [#allocation18], %s4391_s22, %s4391_s22, %s4390_s7  }
  0xde   :  { %s3864_s27 = smov [#allocation22]   ;;  %s3865_s5 = smov [#allocation25]  }
  0xdf   :  { %s178_s19 = sshll.u32 %s3864_s27, 4  ;;  %s201_s2 = sshll.u32 %s3865_s5, 4  ;;  %s179_s19 = int_to_ptr.vmem [resolvable:$true] %s178_s19  ;;  %s202_s2 = int_to_ptr.vmem [resolvable:$true] %s201_s2 }
  0xe0   :  { %s3758_s24 = scalar_lea.hbm %s4379_s12, 4096 }
  0xe1   :  { %p3759_p6 = scmp.ne.s32.totalorder %s4379_s12, %s3758_s24  ;;  %p3762_p7 = scmp.lt.u32.totalorder %s3758_s24, %s4379_s12 }
  0xe3   :  { %p3764_p8 = pnand %p3762_p7, %p3759_p6 }
  0xe5   :  { %3767 = shalt.err (!%p3764_p8)
}
  0xe6   :  { %s3768_s10 = scalar_lea.vmem %s179_s19, 4096  ;;  %p3773_p10 = scmp.lt.s32.totalorder %s179_s19, %s179_s19 }
  0xe7   :  { %p3769_p9 = scmp.ne.s32.totalorder %s179_s19, %s3768_s10  ;;  %p3774_p11 = scmp.lt.s32.totalorder %s3768_s10, %s3768_s10 }
  0xe9   :  { %p3775_p12 = por %p3774_p11, %p3773_p10 }
  0xeb   :  { %p3776_p13 = pnand %p3775_p12, %p3769_p9 }
  0xed   :  { %3779 = shalt.err (!%p3776_p13)
}
  0xee   :  { %184 = dma.hbm_to_vmem [thread:$0]  %s4379_s12, 4096, %s179_s19, [#allocation21], %s4389_s20, %s4389_s20, %s3845_s16  }
  0xef   :  { %s3780_s0 = scalar_lea.hbm %s4381_s14, 16 }
  0xf0   :  { %p3781_p0 = scmp.ne.s32.totalorder %s4381_s14, %s3780_s0  ;;  %p3784_p1 = scmp.lt.u32.totalorder %s3780_s0, %s4381_s14 }
  0xf2   :  { %p3786_p2 = pnand %p3784_p1, %p3781_p0 }
  0xf4   :  { %3789 = shalt.err (!%p3786_p2)
}
  0xf5   :  { %s3790_s11 = scalar_lea.vmem %s202_s2, 16  ;;  %s3794_s29 = scalar_lea.vmem %s202_s2, 32 }
  0xf6   :  { %p3791_p3 = scmp.ne.s32.totalorder %s202_s2, %s3790_s11  ;;  %p3795_p4 = scmp.lt.s32.totalorder %s202_s2, %s202_s2 }
  0xf7   :  { %p3796_p5 = scmp.lt.s32.totalorder %s3794_s29, %s3790_s11 }
  0xf9   :  { %p3797_p6 = por %p3796_p5, %p3795_p4 }
  0xfb   :  { %p3798_p7 = pnand %p3797_p6, %p3791_p3 }
  0xfd   :  { %3801 = shalt.err (!%p3798_p7)
}
  0xfe   :  { %204 = dma.hbm_to_vmem [thread:$0]  %s4381_s14, 16, %s202_s2, [#allocation24]  }
  0xff   :  { %3824 = dma.done.wait [#allocation3], 256  }
 0x100   :  { %3825 = vsyncadd [#allocation3], 4294967040 }
 0x101   :  { %3826 = dma.done.wait [#allocation6], 1280  }
 0x102   :  { %3827 = vsyncadd [#allocation6], 4294966016 }
 0x103   :  { %3828 = dma.done.wait [#allocation9], 64  }
 0x104   :  { %3829 = vsyncadd [#allocation9], 4294967232 }
 0x105   :  { %3830 = dma.done.wait [#allocation12], 12384  }
 0x106   :  { %3831 = vsyncadd [#allocation12], 4294954912 }
 0x107   :  { %3832 = dma.done.wait [#allocation15], 4128  }
 0x108   :  { %3833 = vsyncadd [#allocation15], 4294963168 }
 0x109   :  { %3834 = dma.done.wait [#allocation18], 64  }
 0x10a   :  { %3835 = vsyncadd [#allocation18], 4294967232 }
 0x10b   :  { %3836 = dma.done.wait [#allocation21], 12288  }
 0x10c   :  { %3837 = vsyncadd [#allocation21], 4294955008 }
 0x10d   :  { %3838 = dma.done.wait [#allocation24], 32  }
 0x10e   :  { %3839 = vsyncadd [#allocation24], 4294967264  ;;  %v3866_v0 = vmov 0   ;;  %v250_v1 = vld [vmem:[#allocation2] sm:$0xff]  ;;  %v267_v3 = vld [vmem:[#allocation7 + $0x8] sm:$0xff]  ;;  %v3867_v9 = vmov 0.0   ;;  %v252_v16 = vlaneseq }
 0x10f   :  { %3373 = vset.pattern.permute.xlu0 %v3866_v0  ;;  %v266_v2 = vld [vmem:[#allocation7] sm:$0xff]  ;;  %v268_v4 = vld [vmem:[#allocation7 + $0x10] sm:$0xff]  ;;  %v269_v5 = vld [vmem:[#allocation7 + $0x18] sm:$0xff]  ;;  %528 = vmatprep.mubr.f32.mxu1 %v3867_v9  ;;  %vm274_vm0 = vcmask 523264   ;;  %s3868_s14 = smov 64   ;;  %vm707_vm4 = vcmask 130048  }
 0x110   :  { %255 = vperm.xlu0 %3373, %v250_v1   ;;  %v251_v6 = vld [vmem:[#allocation2 + $0x8] sm:$0xff]  ;;  %v2969_v7 = vpack.c.bf16 %v267_v3, %v266_v2  ;;  %v2973_v8 = vpack.c.bf16 %v269_v5, %v268_v4  ;;  %v270_v10 = vld [vmem:[#allocation7 + $0x20] sm:$0xff]  ;;  %v272_v13 = vld [vmem:[#allocation7 + $0x30] sm:$0xff]  ;;  %v253_v17 = vand.u32 127, %v252_v16  ;;  %s3869_s8 = smov [#allocation26]  }
 0x111   :  { %v271_v11 = vld [vmem:[#allocation7 + $0x28] sm:$0xff]  ;;  %v273_v14 = vld [vmem:[#allocation7 + $0x38] sm:$0xff]  ;;  %vm4215_vm3 = vmpackc.low %vm274_vm0, %vm274_vm0  ;;  %s2471_s13 = sshll.u32 %s3869_s8, 4  ;;  %s2472_s13 = int_to_ptr.vmem [resolvable:$true] %s2471_s13 }
 0x112   :  { %2970 = vmatprep.subr.bf16.mxu0 %v2969_v7  ;;  %v2977_v12 = vpack.c.bf16 %v271_v11, %v270_v10  ;;  %v2981_v15 = vpack.c.bf16 %v273_v14, %v272_v13  ;;  %v400_v24 = vld [vmem:[#allocation11 + $0x8] sm:$0xff]  ;;  %v403_v25 = vld [vmem:[#allocation11 + $0x20] sm:$0xff]  ;;  %v402_v28 = vld [vmem:[#allocation11 + $0x18] sm:$0xff]  ;;  %s3802_s27 = scalar_lea.vmem %s2472_s13, 256  ;;  %p3807_p9 = scmp.lt.s32.totalorder %s2472_s13, %s2472_s13 }
 0x113   :  { %2972 = vmatpush3.bf16.msra.mxu0 %v2969_v7  ;;  %v399_v26 = vld [vmem:[#allocation11] sm:$0xff]  ;;  %v2985_v27 = vpack.c.bf16 %v403_v25, %v400_v24  ;;  %v406_v29 = vld [vmem:[#allocation11 + $0x38] sm:$0xff]  ;;  %v409_v30 = vld [vmem:[#allocation11 + $0x50] sm:$0xff]  ;;  %p3803_p8 = scmp.ne.s32.totalorder %s2472_s13, %s3802_s27  ;;  %p3808_p10 = scmp.lt.s32.totalorder %s3802_s27, %s3802_s27 }
 0x114   :  { %258 = vperm.xlu0 %3373, %v251_v6   ;;  %2974 = vmatprep.subr.bf16.mxu0 %v2973_v8  ;;  %v2987_v31 = vpack.c.bf16 %v402_v28, %v399_v26  ;;  %v2989_v32 = vpack.c.bf16 %v409_v30, %v406_v29  ;;  %v401_v33 = vld [vmem:[#allocation11 + $0x10] sm:$0xff]  ;;  %v404_v34 = vld [vmem:[#allocation11 + $0x28] sm:$0xff]  ;;  %v415_v39 = vld [vmem:[#allocation11 + $0x80] sm:$0xff] }
 0x115   :  { %v405_v35 = vld [vmem:[#allocation11 + $0x30] sm:$0xff]  ;;  %2986 = vmatprep.subr.bf16.mxu1 %v2985_v27  ;;  %v3017_v36 = vpack.c.bf16 %v404_v34, %v401_v33  ;;  %v408_v37 = vld [vmem:[#allocation11 + $0x48] sm:$0xff]  ;;  %v407_v41 = vld [vmem:[#allocation11 + $0x40] sm:$0xff]  ;;  %p3809_p11 = por %p3808_p10, %p3807_p9 }
 0x116   :  { %v412_v38 = vld [vmem:[#allocation11 + $0x68] sm:$0xff]  ;;  %2988 = vmatpush1.bf16.msra.mxu1 %v2987_v31  ;;  %v2991_v40 = vpack.c.bf16 %v408_v37, %v405_v35  ;;  %v410_v42 = vld [vmem:[#allocation11 + $0x58] sm:$0xff]  ;;  %v411_v45 = vld [vmem:[#allocation11 + $0x60] sm:$0xff] }
 0x117   :  { %2976 = vmatpush3.bf16.msra.mxu0 %v2973_v8  ;;  %2990 = vmatprep.subr.bf16.mxu1 %v2989_v32  ;;  %v2993_v43 = vpack.c.bf16 %v415_v39, %v412_v38  ;;  %v3021_v44 = vpack.c.bf16 %v410_v42, %v407_v41  ;;  %v414_v46 = vld [vmem:[#allocation11 + $0x78] sm:$0xff]  ;;  %v421_v57 = vld [vmem:[#allocation11 + $0xb0] sm:$0xff]  ;;  %v416_v60 = vld [vmem:[#allocation11 + $0x88] sm:$0xff]  ;;  %p3810_p12 = pnand %p3809_p11, %p3803_p8 }
 0x118   :  { %2978 = vmatprep.subr.bf16.mxu0 %v2977_v12  ;;  %v2995_v47 = vpack.c.bf16 %v414_v46, %v411_v45  ;;  %v418_v56 = vld [vmem:[#allocation11 + $0x98] sm:$0xff]  ;;  %v413_v58 = vld [vmem:[#allocation11 + $0x70] sm:$0xff]  ;;  %v420_v62 = vld [vmem:[#allocation11 + $0xa8] sm:$0xff] }
 0x119   :  { %v2997_v59 = vpack.c.bf16 %v421_v57, %v418_v56  ;;  %v417_v61 = vld [vmem:[#allocation11 + $0x90] sm:$0xff]  ;;  %v3025_v63 = vpack.c.bf16 %v416_v60, %v413_v58  ;;  %v424_v1 = vld [vmem:[#allocation11 + $0xc8] sm:$0xff]  ;;  %v427_v2 = vld [vmem:[#allocation11 + $0xe0] sm:$0xff] }
 0x11a   :  { %2992 = vmatpush1.bf16.msra.mxu1 %v2991_v40  ;;  %v2999_v0 = vpack.c.bf16 %v420_v62, %v417_v61  ;;  %v419_v3 = vld [vmem:[#allocation11 + $0xa0] sm:$0xff]  ;;  %v3001_v4 = vpack.c.bf16 %v427_v2, %v424_v1  ;;  %v422_v5 = vld [vmem:[#allocation11 + $0xb8] sm:$0xff]  ;;  %v425_v13 = vld [vmem:[#allocation11 + $0xd0] sm:$0xff]  ;;  %v4201_v62 = vshrl.u32 %v252_v16, 7 }
 0x11b   :  { %2980 = vmatpush3.bf16.msra.mxu0 %v2977_v12  ;;  %2994 = vmatprep.subr.bf16.mxu1 %v2993_v43  ;;  %v423_v6 = vld [vmem:[#allocation11 + $0xc0] sm:$0xff]  ;;  %v426_v7 = vld [vmem:[#allocation11 + $0xd8] sm:$0xff]  ;;  %v3029_v8 = vpack.c.bf16 %v422_v5, %v419_v3  ;;  %v433_v12 = vld [vmem:[#allocation11 + $0x110] sm:$0xff] }
 0x11c   :  { %2982 = vmatprep.subr.bf16.mxu0 %v2981_v15  ;;  %v3003_v10 = vpack.c.bf16 %v426_v7, %v423_v6  ;;  %v430_v11 = vld [vmem:[#allocation11 + $0xf8] sm:$0xff]  ;;  %v439_v24 = vld [vmem:[#allocation11 + $0x140] sm:$0xff]  ;;  %v445_v33 = vld [vmem:[#allocation11 + $0x170] sm:$0xff]  ;;  %v459_v1 = vsub.s32 2, %v4201_v62 }
 0x11d   :  { %v3005_v14 = vpack.c.bf16 %v433_v12, %v430_v11  ;;  %v431_v25 = vld [vmem:[#allocation11 + $0x100] sm:$0xff]  ;;  %v434_v27 = vld [vmem:[#allocation11 + $0x118] sm:$0xff]  ;;  %v437_v34 = vld [vmem:[#allocation11 + $0x130] sm:$0xff] }
 0x11e   :  { %2996 = vmatpush1.bf16.msra.mxu1 %v2995_v47  ;;  %v435_v28 = vld [vmem:[#allocation11 + $0x120] sm:$0xff]  ;;  %v438_v29 = vld [vmem:[#allocation11 + $0x138] sm:$0xff]  ;;  %v3037_v30 = vpack.c.bf16 %v434_v27, %v431_v25  ;;  %v441_v37 = vld [vmem:[#allocation11 + $0x150] sm:$0xff] }
 0x11f   :  { %2984 = vmatpush3.bf16.msra.mxu0 %v2981_v15  ;;  %2998 = vmatprep.subr.bf16.mxu1 %v2997_v59  ;;  %v428_v15 = vld [vmem:[#allocation11 + $0xe8] sm:$0xff]  ;;  %v3011_v31 = vpack.c.bf16 %v438_v29, %v435_v28  ;;  %v442_v32 = vld [vmem:[#allocation11 + $0x158] sm:$0xff]  ;;  %v443_v41 = vld [vmem:[#allocation11 + $0x160] sm:$0xff] }
 0x120   :  { %3018 = vmatprep.subr.bf16.mxu0 %v3017_v36  ;;  %v3013_v35 = vpack.c.bf16 %v445_v33, %v442_v32  ;;  %v444_v38 = vld [vmem:[#allocation11 + $0x168] sm:$0xff]  ;;  %v446_v42 = vld [vmem:[#allocation11 + $0x178] sm:$0xff] }
 0x121   :  { %v3015_v40 = vpack.c.bf16 %v444_v38, %v441_v37  ;;  %v3045_v43 = vpack.c.bf16 %v446_v42, %v443_v41  ;;  %v4233_v37 = vld [vmem:[#allocation5 + $0x8] sm:$0xff] }
 0x122   :  { %3000 = vmatpush1.bf16.msra.mxu1 %v2999_v0 }
 0x123   :  { %3002 = vmatprep.subr.bf16.mxu1 %v3001_v4 }
 0x126   :  { %3004 = vmatpush1.bf16.msra.mxu1 %v3003_v10 }
 0x127   :  { %3006 = vmatprep.subr.bf16.mxu1 %v3005_v14 }
 0x18f   :  { %v256_v18 = vpop.permute.xlu0 %255 }
 0x190   :  { %vm260_vm1 = vcmp.eq.s32.totalorder %v253_v17, %v256_v18  ;;  %v432_v18 = vld [vmem:[#allocation11 + $0x108] sm:$0xff] }
 0x191   :  { %v2490_v19 = vsel %vm260_vm1, 1.0, %v3867_v9 }
 0x192   :  { %2700 = vmatprep.mubr.msk.f32.mxu0 %vm274_vm0, %v2490_v19  ;;  %v3033_v19 = vpack.c.bf16 %v428_v15, %v425_v13 }
 0x193   :  { %v259_v20 = vpop.permute.xlu0 %258 }
 0x194   :  { %vm261_vm2 = vcmp.eq.s32.totalorder %v253_v17, %v259_v20  ;;  %v429_v17 = vld [vmem:[#allocation11 + $0xf0] sm:$0xff] }
 0x195   :  { %v2491_v21 = vsel %vm261_vm2, 1.0, %v3867_v9  ;;  %v3007_v20 = vpack.c.bf16 %v432_v18, %v429_v17 }
 0x196   :  { %2701 = vmatmul.mubr.msk.f32.vlgmr.msra.gmra.mrb[0].mxu0 %vm274_vm0, %v2491_v21  ;;  %v436_v21 = vld [vmem:[#allocation11 + $0x128] sm:$0xff] }
 0x197   :  { %3020 = vmatpush3.bf16.msra.mxu0 %v3017_v36  ;;  %v3009_v26 = vpack.c.bf16 %v439_v24, %v436_v21  ;;  %3008 = vmatpush1.bf16.msra.mxu1 %v3007_v20  ;;  %v440_v36 = vld [vmem:[#allocation11 + $0x148] sm:$0xff] }
 0x198   :  { %3022 = vmatprep.subr.bf16.mxu0 %v3021_v44  ;;  %v3041_v39 = vpack.c.bf16 %v440_v36, %v437_v34 }
 0x199   :  { %3010 = vmatprep.subr.bf16.mxu1 %v3009_v26 }
 0x19b   :  { %3024 = vmatpush3.bf16.msra.mxu0 %v3021_v44  ;;  %3012 = vmatpush1.bf16.msra.mxu1 %v3011_v31 }
 0x19c   :  { %3026 = vmatprep.subr.bf16.mxu0 %v3025_v63  ;;  %3014 = vmatprep.subr.bf16.mxu1 %v3013_v35 }
 0x19f   :  { %3028 = vmatpush3.bf16.msra.mxu0 %v3025_v63  ;;  %3016 = vmatpush1.bf16.msra.mxu1 %v3015_v40  ;;  %v451_v63 = vsub.s32 0, %v4201_v62 }
 0x1a0   :  { %3030 = vmatprep.subr.bf16.mxu0 %v3029_v8 }
 0x1a3   :  { %3032 = vmatpush3.bf16.msra.mxu0 %v3029_v8 }
 0x1a4   :  { %3034 = vmatprep.subr.bf16.mxu0 %v3033_v19 }
 0x1a7   :  { %3036 = vmatpush3.bf16.msra.mxu0 %v3033_v19 }
 0x1a8   :  { %3038 = vmatprep.subr.bf16.mxu0 %v3037_v30 }
 0x1ab   :  { %3040 = vmatpush3.bf16.msra.mxu0 %v3037_v30 }
 0x1ac   :  { %3042 = vmatprep.subr.bf16.mxu0 %v3041_v39 }
 0x1af   :  { %3044 = vmatpush3.bf16.msra.mxu0 %v3041_v39  ;;  %v4236_v39 = vld [vmem:[#allocation5] sm:$0xff] }
 0x1b0   :  { %3046 = vmatprep.subr.bf16.mxu0 %v3045_v43 }
 0x1b3   :  { %3048 = vmatpush3.bf16.msra.mxu0 %v3045_v43 }
 0x269   :  { %v4181_v22 = vpop.f32.mrb[0].mxu0 }
 0x26a   :  { %v4183_v23 = vpop.f32.mrb[1].mxu0 }
 0x26b   :  { %360 = vadd.xlane.f32.xlu1 %v4183_v23 }
 0x26f   :  { %362 = vadd.xlane.f32.xlu1 %v4181_v22 }
 0x2f8   :  { %v361_v48 = vpop.xlane.xlu1 %360 }
 0x2f9   :  { %v365_v49 = vmul.f32 0.0078125, %v361_v48 }
 0x2fb   :  { %v4188_v50 = vsub.f32 %v4183_v23, %v365_v49 }
 0x2fc   :  { %v363_v51 = vpop.xlane.xlu1 %362 }
 0x2fd   :  { %v366_v52 = vmul.f32 0.0078125, %v363_v51  ;;  %v369_v53 = vmul.f32 %v4188_v50, %v4188_v50 }
 0x2ff   :  { %v4193_v54 = vsub.f32 %v4181_v22, %v366_v52  ;;  %371 = vadd.xlane.f32.xlu0 %v369_v53  ;;  %v2494_v52 = vld [vmem:[#allocation8] ss:$0 sm:$0xff] }
 0x301   :  { %v370_v55 = vmul.f32 %v4193_v54, %v4193_v54 }
 0x303   :  { %373 = vadd.xlane.f32.xlu1 %v370_v55  ;;  %v2495_v55 = vld [vmem:[#allocation10] ss:$0 sm:$0xff] }
 0x38c   :  { %v372_v44 = vpop.xlane.xlu0 %371 }
 0x38d   :  { %v375_v45 = vmul.f32 0.0078125, %v372_v44 }
 0x38f   :  { %v377_v46 = vadd.f32 1e-05, %v375_v45 }
 0x390   :  { %v374_v47 = vpop.xlane.xlu1 %373 }
 0x391   :  { %3404 = vrsqrt.f32 %v377_v46  ;;  %v376_v48 = vmul.f32 0.0078125, %v374_v47 }
 0x393   :  { %v378_v49 = vadd.f32 1e-05, %v376_v48 }
 0x395   :  { %3406 = vrsqrt.f32 %v378_v49 }
 0x39b   :  { %v3405_v51 = vpop.eup %3404 }
 0x39c   :  { %v381_v53 = vmul.f32 %v3405_v51, %v4188_v50  ;;  %v447_v50 = vld [vmem:[#allocation13] sm:$0x7] }
 0x39d   :  { %v452_v0 = vrot.slane %v447_v50, %v451_v63  ;;  %v460_v5 = vrot.slane %v447_v50, %v459_v1 }
 0x39e   :  { %v389_v56 = vmul.f32 %v2494_v52, %v381_v53 }
 0x39f   :  { %v3407_v57 = vpop.eup %3406 }
 0x3a0   :  { %v397_v58 = vadd.f32 %v2495_v55, %v389_v56  ;;  %v382_v59 = vmul.f32 %v3407_v57, %v4193_v54  ;;  %v455_v54 = vsub.s32 1, %v4201_v62 }
 0x3a2   :  { %529 = vmatmul.mubr.f32.vlgmr.msra.gmra.mrb[0].mxu1 %v397_v58  ;;  %2735 = vmatprep.mubr.f32.mxu0 %v397_v58  ;;  %v390_v60 = vmul.f32 %v2494_v52, %v382_v59  ;;  %v456_v16 = vrot.slane %v447_v50, %v455_v54 }
 0x3a3   :  { %534 = vmatprep.mubr.f32.mxu1 %v3867_v9 }
 0x3a4   :  { %v398_v61 = vadd.f32 %v2495_v55, %v390_v60 }
 0x3a6   :  { %535 = vmatmul.mubr.f32.gmra.mrb[2].mxu1 %v398_v61  ;;  %2736 = vmatmul.mubr.f32.vlgmr.msra.gmra.mrb[2].mxu0 %v398_v61 }
 0x475   :  { %v530_v2 = vpop.f32.mrb[0].mxu1 }
 0x476   :  { %v531_v3 = vadd.f32 %v530_v2, %v452_v0  ;;  %v532_v4 = vpop.f32.mrb[1].mxu1 }
 0x477   :  { %v533_v12 = vadd.f32 %v532_v4, %v456_v16 }
 0x478   :  { %2742 = vmatprep.mubr.msk.f32.mxu1 %vm274_vm0, %v531_v3 }
 0x479   :  { %v536_v6 = vpop.f32.mrb[2].mxu1  ;;  %v2737_v7 = vpop.f32.mrb[2].mxu0 }
 0x47a   :  { %v613_v8 = vadd.f32 %v2737_v7, %v460_v5  ;;  %v538_v10 = vpop.f32.mrb[3].mxu1  ;;  %v607_v11 = vpop.f32.mrb[3].mxu0  ;;  %v537_v21 = vadd.f32 %v536_v6, %v452_v0 }
 0x47b   :  { %v539_v13 = vadd.f32 %v538_v10, %v456_v16  ;;  %v608_v14 = vadd.f32 %v607_v11, %v460_v5 }
 0x47d   :  { %v3374_v17 = vpack.i.bf16 %v539_v13, %v533_v12  ;;  %v3049_v18 = vpack.c.bf16 %v539_v13, %v533_v12  ;;  %v3379_v19 = vpack.i.bf16 %v613_v8, %v608_v14  ;;  %v3055_v20 = vpack.c.bf16 %v613_v8, %v608_v14  ;;  %v1027_v12 = vld [vmem:[#allocation14] sm:$0xff]  ;;  %v1028_v13 = vld [vmem:[#allocation14 + $0x8] sm:$0xff]  ;;  %v1029_v14 = vld [vmem:[#allocation14 + $0x10] sm:$0xff] }
 0x47f   :  { %3375 = vrot.lane.b32.xlu1 %v3374_v17, %s3868_s14  ;;  %3051 = vmatprep.subr.msk.bf16.mxu1 %vm4215_vm3, %v3049_v18  ;;  %v3069_v17 = vpack.c.bf16 %v1028_v13, %v1027_v12  ;;  %v1172_v12 = vld [vmem:[#allocation20 + $0x18] sm:$0xff]  ;;  %v1169_v13 = vld [vmem:[#allocation20] sm:$0xff] }
 0x480   :  { %3054 = vmatpush3.bf16.xpose.msk.msra.mxu1 %vm4215_vm3, %v3049_v18  ;;  %v1030_v18 = vld [vmem:[#allocation14 + $0x18] sm:$0xff] }
 0x481   :  { %3056 = vmatprep.subr.bf16.mxu1 %v3055_v20 }
 0x483   :  { %811 = vrot.lane.b32.xlu1 %v531_v3, %s3868_s14 }
 0x487   :  { %813 = vrot.lane.b32.xlu1 %v537_v21, %s3868_s14  ;;  %2743 = vmatmul.mubr.msk.f32.vlgmr.msra.gmra.mrb[4].mxu1 %vm274_vm0, %v537_v21  ;;  %v1032_v21 = vld [vmem:[#allocation14 + $0x28] sm:$0xff] }
 0x488   :  { %3058 = vmatpush3.bf16.msra.mxu1 %v3055_v20  ;;  %v1031_v20 = vld [vmem:[#allocation14 + $0x20] sm:$0xff] }
 0x4f1   :  { %v3376_v24 = vpop.permute.xlu1 %3375 }
 0x4f2   :  { %v3378_v25 = vunpack.i.h.bf16 %v3376_v24  ;;  %v3377_v26 = vunpack.i.l.bf16 %v3376_v24  ;;  %v3077_v24 = vpack.c.bf16 %v1032_v21, %v1031_v20  ;;  %v1173_v21 = vld [vmem:[#allocation20 + $0x20] sm:$0xff] }
 0x4f4   :  { %v3059_v27 = vpack.c.bf16 %v3378_v25, %v3377_v26  ;;  %v1033_v25 = vld [vmem:[#allocation14 + $0x30] sm:$0xff]  ;;  %v1034_v26 = vld [vmem:[#allocation14 + $0x38] sm:$0xff] }
 0x4f5   :  { %v812_v28 = vpop.permute.xlu1 %811 }
 0x4f6   :  { %3061 = vmatprep.subr.msk.bf16.mxu0 %vm4215_vm3, %v3059_v27  ;;  %2756 = vmatprep.mubr.msk.f32.mxu0 %vm274_vm0, %v812_v28  ;;  %v1035_v28 = vld [vmem:[#allocation14 + $0x40] sm:$0xff] }
 0x4f7   :  { %3064 = vmatpush3.bf16.xpose.msk.msra.mxu0 %vm4215_vm3, %v3059_v27  ;;  %v3081_v27 = vpack.c.bf16 %v1034_v26, %v1033_v25  ;;  %v1180_v25 = vld [vmem:[#allocation20 + $0x58] sm:$0xff] }
 0x4f9   :  { %v814_v29 = vpop.permute.xlu1 %813 }
 0x4fe   :  { %2757 = vmatmul.mubr.msk.f32.vlgmr.msra.gmra.mrb[4].mxu0 %vm274_vm0, %v814_v29  ;;  %v1036_v29 = vld [vmem:[#allocation14 + $0x48] sm:$0xff] }
 0x55a   :  { %v2744_v30 = vpop.f32.mrb[4].mxu1 }
 0x55b   :  { %v694_v31 = vpop.f32.mrb[5].mxu1  ;;  %v704_v35 = vmul.f32 0.125, %v2744_v30  ;;  %v3085_v30 = vpack.c.bf16 %v1036_v29, %v1035_v28  ;;  %v1177_v28 = vld [vmem:[#allocation20 + $0x40] sm:$0xff]  ;;  %v1179_v29 = vld [vmem:[#allocation20 + $0x50] sm:$0xff] }
 0x55c   :  { %v703_v45 = vmul.f32 0.125, %v694_v31  ;;  %v1037_v31 = vld [vmem:[#allocation14 + $0x50] sm:$0xff] }
 0x55d   :  { %v706_v43 = vadd.f32 %v704_v35, %v4233_v37  ;;  %v1040_v35 = vld [vmem:[#allocation14 + $0x68] sm:$0xff] }
 0x55e   :  { %v705_v46 = vadd.f32 %v703_v45, %v4236_v39 }
 0x55f   :  { %v711_v44 = vsel %vm707_vm4, %v706_v43, -inf }
 0x560   :  { %v708_v47 = vsel %vm707_vm4, %v705_v46, -inf }
 0x5d1   :  { %v2758_v32 = vpop.f32.mrb[4].mxu0 }
 0x5d2   :  { %v903_v33 = vmul.f32 0.125, %v2758_v32  ;;  %v893_v34 = vpop.f32.mrb[5].mxu0  ;;  %v1038_v32 = vld [vmem:[#allocation14 + $0x58] sm:$0xff] }
 0x5d3   :  { %v902_v36 = vmul.f32 0.125, %v893_v34  ;;  %v1039_v34 = vld [vmem:[#allocation14 + $0x60] sm:$0xff] }
 0x5d4   :  { %v905_v38 = vadd.f32 %v903_v33, %v4233_v37  ;;  %v3089_v33 = vpack.c.bf16 %v1038_v32, %v1037_v31 }
 0x5d5   :  { %v904_v40 = vadd.f32 %v902_v36, %v4236_v39  ;;  %v3093_v36 = vpack.c.bf16 %v1040_v35, %v1039_v34 }
 0x5d6   :  { %v909_v41 = vsel %vm707_vm4, %v905_v38, -inf }
 0x5d7   :  { %910 = vmax.xlane.f32.xlu0 %v909_v41  ;;  %v906_v42 = vsel %vm707_vm4, %v904_v40, -inf  ;;  %v1041_v41 = vld [vmem:[#allocation14 + $0x70] sm:$0xff] }
 0x5d8   :  { %907 = vmax.xlane.f32.xlu1 %v906_v42  ;;  %v1042_v42 = vld [vmem:[#allocation14 + $0x78] sm:$0xff] }
 0x5dc   :  { %712 = vmax.xlane.f32.xlu1 %v711_v44 }
 0x5ed   :  { %3380 = vrot.lane.b32.xlu0 %v3379_v19, %s3868_s14  ;;  %v3073_v19 = vpack.c.bf16 %v1030_v18, %v1029_v14  ;;  %v1174_v18 = vld [vmem:[#allocation20 + $0x28] sm:$0xff] }
 0x60c   :  { %709 = vmax.xlane.f32.xlu0 %v708_v47 }
 0x664   :  { %v911_v48 = vpop.xlane.xlu0 %910 }
 0x665   :  { %v913_v49 = vsub.f32 %v905_v38, %v911_v48  ;;  %v908_v51 = vpop.xlane.xlu1 %907 }
 0x666   :  { %v912_v52 = vsub.f32 %v904_v40, %v908_v51 }
 0x667   :  { %v916_v53 = vmul.f32 1.442695, %v913_v49 }
 0x668   :  { %v914_v55 = vmul.f32 1.442695, %v912_v52  ;;  %v3381_v56 = vpop.permute.xlu0 %3380 }
 0x669   :  { %v3383_v57 = vunpack.i.h.bf16 %v3381_v56  ;;  %v3382_v58 = vunpack.i.l.bf16 %v3381_v56  ;;  %v713_v2 = vpop.xlane.xlu1 %712 }
 0x66a   :  { %3408 = vpow2.f32 %v914_v55  ;;  %v715_v3 = vsub.f32 %v706_v43, %v713_v2  ;;  %v3097_v43 = vpack.c.bf16 %v1042_v42, %v1041_v41  ;;  %v1182_v41 = vld [vmem:[#allocation20 + $0x68] sm:$0xff]  ;;  %v1184_v42 = vld [vmem:[#allocation20 + $0x78] sm:$0xff] }
 0x66b   :  { %3410 = vpow2.f32 %v916_v53  ;;  %v3065_v59 = vpack.c.bf16 %v3383_v57, %v3382_v58 }
 0x66c   :  { %v718_v16 = vmul.f32 1.442695, %v715_v3 }
 0x66d   :  { %3066 = vmatprep.subr.bf16.mxu0 %v3065_v59 }
 0x66e   :  { %3068 = vmatpush3.bf16.msra.mxu0 %v3065_v59 }
 0x66f   :  { %3070 = vmatprep.subr.bf16.mxu0 %v3069_v17 }
 0x674   :  { %v3409_v60 = vpop.eup %3408 }
 0x675   :  { %v3411_v61 = vpop.eup %3410  ;;  %2763 = vmatprep.mubr.msk.f32.mxu0 %vm707_vm4, %v3409_v60  ;;  %v918_v50 = vsel %vm707_vm4, %v3409_v60, 0.0 }
 0x676   :  { %2764 = vmatmul.mubr.msk.f32.vlgmr.msra.gmra.mrb[6].mxu0 %vm707_vm4, %v3411_v61  ;;  %919 = vadd.xlane.f32.xlu1 %v918_v50  ;;  %v921_v0 = vsel %vm707_vm4, %v3411_v61, 0.0 }
 0x677   :  { %3072 = vmatpush3.bf16.msra.mxu0 %v3069_v17  ;;  %v1171_v17 = vld [vmem:[#allocation20 + $0x10] sm:$0xff] }
 0x678   :  { %3074 = vmatprep.subr.bf16.mxu0 %v3073_v19 }
 0x67a   :  { %922 = vadd.xlane.f32.xlu1 %v921_v0 }
 0x67b   :  { %3076 = vmatpush3.bf16.msra.mxu0 %v3073_v19  ;;  %v1176_v19 = vld [vmem:[#allocation20 + $0x38] sm:$0xff] }
 0x67c   :  { %3078 = vmatprep.subr.bf16.mxu0 %v3077_v24  ;;  %v3105_v20 = vpack.c.bf16 %v1176_v19, %v1174_v18 }
 0x67f   :  { %3080 = vmatpush3.bf16.msra.mxu0 %v3077_v24  ;;  %v1175_v24 = vld [vmem:[#allocation20 + $0x30] sm:$0xff] }
 0x680   :  { %3082 = vmatprep.subr.bf16.mxu0 %v3081_v27  ;;  %v3107_v26 = vpack.c.bf16 %v1175_v24, %v1173_v21  ;;  %v2509_v21 = vld [vmem:[#allocation17] ss:$0 sm:$0xff] }
 0x683   :  { %3084 = vmatpush3.bf16.msra.mxu0 %v3081_v27 }
 0x684   :  { %3086 = vmatprep.subr.bf16.mxu0 %v3085_v30 }
 0x687   :  { %3088 = vmatpush3.bf16.msra.mxu0 %v3085_v30  ;;  %v3111_v30 = vpack.c.bf16 %v1179_v29, %v1177_v28 }
 0x688   :  { %3090 = vmatprep.subr.bf16.mxu0 %v3089_v33 }
 0x68b   :  { %3092 = vmatpush3.bf16.msra.mxu0 %v3089_v33 }
 0x68c   :  { %3094 = vmatprep.subr.bf16.mxu0 %v3093_v36 }
 0x68f   :  { %3096 = vmatpush3.bf16.msra.mxu0 %v3093_v36 }
 0x690   :  { %3098 = vmatprep.subr.bf16.mxu0 %v3097_v43 }
 0x693   :  { %3100 = vmatpush3.bf16.msra.mxu0 %v3097_v43  ;;  %v3113_v43 = vpack.c.bf16 %v1184_v42, %v1182_v41  ;;  %v1300_v42 = vld [vmem:[#allocation22 + $0x30] sm:$0xff] }
 0x699   :  { %v710_v4 = vpop.xlane.xlu0 %709 }
 0x69a   :  { %v714_v5 = vsub.f32 %v705_v46, %v710_v4 }
 0x69c   :  { %v716_v6 = vmul.f32 1.442695, %v714_v5 }
 0x69e   :  { %3412 = vpow2.f32 %v716_v6 }
 0x69f   :  { %3414 = vpow2.f32 %v718_v16  ;;  %v2508_v16 = vld [vmem:[#allocation16] ss:$0 sm:$0xff] }
 0x6a8   :  { %v3413_v7 = vpop.eup %3412 }
 0x6a9   :  { %v3415_v8 = vpop.eup %3414  ;;  %2749 = vmatprep.mubr.msk.f32.mxu1 %vm707_vm4, %v3413_v7  ;;  %v720_v10 = vsel %vm707_vm4, %v3413_v7, 0.0 }
 0x6aa   :  { %2750 = vmatmul.mubr.msk.f32.vlgmr.msra.gmra.mrb[6].mxu1 %vm707_vm4, %v3415_v8  ;;  %721 = vadd.xlane.f32.xlu1 %v720_v10  ;;  %v723_v11 = vsel %vm707_vm4, %v3415_v8, 0.0 }
 0x6ab   :  { %1265 = vmatprep.mubr.f32.mxu1 %v3867_v9 }
 0x6ae   :  { %724 = vadd.xlane.f32.xlu1 %v723_v11  ;;  %v1170_v11 = vld [vmem:[#allocation20 + $0x8] sm:$0xff] }
 0x6af   :  { %v3101_v14 = vpack.c.bf16 %v1172_v12, %v1170_v11  ;;  %v1199_v11 = vld [vmem:[#allocation20 + $0xf0] sm:$0xff] }
 0x6b1   :  { %3102 = vmatprep.subr.bf16.mxu1 %v3101_v14 }
 0x703   :  { %v920_v38 = vpop.xlane.xlu1 %919 }
 0x707   :  { %v923_v40 = vpop.xlane.xlu1 %922 }
 0x708   :  { %3416 = vrcp.f32 %v923_v40 }
 0x709   :  { %3418 = vrcp.f32 %v920_v38 }
 0x712   :  { %v3417_v44 = vpop.eup %3416 }
 0x713   :  { %v3419_v46 = vpop.eup %3418 }
 0x737   :  { %v722_v55 = vpop.xlane.xlu1 %721 }
 0x738   :  { %3420 = vrcp.f32 %v722_v55  ;;  %v1190_v55 = vld [vmem:[#allocation20 + $0xa8] sm:$0xff] }
 0x73b   :  { %v725_v56 = vpop.xlane.xlu1 %724 }
 0x73c   :  { %3422 = vrcp.f32 %v725_v56  ;;  %v1192_v56 = vld [vmem:[#allocation20 + $0xb8] sm:$0xff] }
 0x742   :  { %v3421_v57 = vpop.eup %3420 }
 0x746   :  { %v3423_v58 = vpop.eup %3422 }
 0x749   :  { %v2765_v45 = vpop.f32.mrb[6].mxu0 }
 0x74a   :  { %v1016_v47 = vmul.f32 %v3417_v44, %v2765_v45  ;;  %v1004_v48 = vpop.f32.mrb[7].mxu0  ;;  %v1181_v44 = vld [vmem:[#allocation20 + $0x60] sm:$0xff]  ;;  %v1183_v45 = vld [vmem:[#allocation20 + $0x70] sm:$0xff] }
 0x74b   :  { %v1014_v49 = vmul.f32 %v3419_v46, %v1004_v48  ;;  %v3115_v46 = vpack.c.bf16 %v1183_v45, %v1181_v44  ;;  %v1188_v48 = vld [vmem:[#allocation20 + $0x98] sm:$0xff]  ;;  %v1302_v45 = vld [vmem:[#allocation22 + $0x40] sm:$0xff] }
 0x74d   :  { %v3384_v51 = vpack.i.bf16 %v1016_v47, %v1014_v49  ;;  %v1186_v47 = vld [vmem:[#allocation20 + $0x88] sm:$0xff] }
 0x74e   :  { %v3117_v49 = vpack.c.bf16 %v1188_v48, %v1186_v47  ;;  %v1304_v48 = vld [vmem:[#allocation22 + $0x50] sm:$0xff] }
 0x74f   :  { %3385 = vrot.lane.b32.xlu1 %v3384_v51, %s3868_s14  ;;  %v1185_v51 = vld [vmem:[#allocation20 + $0x80] sm:$0xff] }
 0x77d   :  { %v2751_v52 = vpop.f32.mrb[6].mxu1 }
 0x77e   :  { %v798_v53 = vpop.f32.mrb[7].mxu1  ;;  %v810_v60 = vmul.f32 %v3423_v58, %v2751_v52  ;;  %v1187_v52 = vld [vmem:[#allocation20 + $0x90] sm:$0xff]  ;;  %v1189_v58 = vld [vmem:[#allocation20 + $0xa0] sm:$0xff] }
 0x77f   :  { %v808_v61 = vmul.f32 %v3421_v57, %v798_v53  ;;  %v3119_v53 = vpack.c.bf16 %v1187_v52, %v1185_v51  ;;  %v3121_v57 = vpack.c.bf16 %v1192_v56, %v1190_v55  ;;  %v1306_v52 = vld [vmem:[#allocation22 + $0x60] sm:$0xff]  ;;  %v1308_v56 = vld [vmem:[#allocation22 + $0x70] sm:$0xff] }
 0x7c1   :  { %v3386_v59 = vpop.permute.xlu1 %3385 }
 0x7c2   :  { %v3388_v50 = vunpack.i.h.bf16 %v3386_v59  ;;  %v3387_v0 = vunpack.i.l.bf16 %v3386_v59  ;;  %v1191_v59 = vld [vmem:[#allocation20 + $0xb0] sm:$0xff] }
 0x7c4   :  { %v1025_v2 = vsel %vm274_vm0, %v808_v61, %v3387_v0  ;;  %v1026_v3 = vsel %vm274_vm0, %v810_v60, %v3388_v50  ;;  %v3123_v60 = vpack.c.bf16 %v1191_v59, %v1189_v58  ;;  %v1194_v61 = vld [vmem:[#allocation20 + $0xc8] sm:$0xff]  ;;  %v1196_v50 = vld [vmem:[#allocation20 + $0xd8] sm:$0xff]  ;;  %v1193_v0 = vld [vmem:[#allocation20 + $0xc0] sm:$0xff] }
 0x7c5   :  { %2798 = vmatprep.mubr.f32.mxu0 %v1025_v2  ;;  %v3125_v2 = vpack.c.bf16 %v1196_v50, %v1194_v61 }
 0x7c6   :  { %2799 = vmatmul.mubr.f32.vlgmr.msra.gmra.mrb[8].mxu0 %v1026_v3  ;;  %v1195_v3 = vld [vmem:[#allocation20 + $0xd0] sm:$0xff] }
 0x899   :  { %v2800_v4 = vpop.f32.mrb[8].mxu0 }
 0x89a   :  { %v1119_v5 = vadd.f32 %v2800_v4, %v4181_v22  ;;  %v1109_v6 = vpop.f32.mrb[9].mxu0  ;;  %v3103_v22 = vpack.c.bf16 %v1171_v17, %v1169_v13  ;;  %v1198_v4 = vld [vmem:[#allocation20 + $0xe8] sm:$0xff] }
 0x89b   :  { %v1118_v7 = vadd.f32 %v1109_v6, %v4183_v23  ;;  %v1178_v23 = vld [vmem:[#allocation20 + $0x48] sm:$0xff] }
 0x89c   :  { %v4263_v10 = vadd.f32 %v2508_v16, %v1119_v5  ;;  %3104 = vmatpush1.bf16.msra.mxu1 %v3103_v22  ;;  %v3109_v27 = vpack.c.bf16 %v1180_v25, %v1178_v23  ;;  %v1200_v5 = vld [vmem:[#allocation20 + $0xf8] sm:$0xff] }
 0x89d   :  { %v4260_v8 = vadd.f32 %v2508_v16, %v1118_v7  ;;  %3106 = vmatprep.subr.bf16.mxu1 %v3105_v20  ;;  %v3127_v16 = vpack.c.bf16 %v1195_v3, %v1193_v0  ;;  %v3129_v6 = vpack.c.bf16 %v1200_v5, %v1198_v4  ;;  %v1197_v7 = vld [vmem:[#allocation20 + $0xe0] sm:$0xff]  ;;  %v2510_v23 = vld [vmem:[#allocation19] ss:$0 sm:$0xff] }
 0x89e   :  { %v3131_v12 = vpack.c.bf16 %v1199_v11, %v1197_v7 }
 0x89f   :  { %1131 = vadd.xlane.f32.xlu0 %v4260_v8 }
 0x8a0   :  { %3108 = vmatpush1.bf16.msra.mxu1 %v3107_v26 }
 0x8a1   :  { %3110 = vmatprep.subr.bf16.mxu1 %v3109_v27 }
 0x8a3   :  { %1133 = vadd.xlane.f32.xlu0 %v4263_v10 }
 0x8a4   :  { %3112 = vmatpush1.bf16.msra.mxu1 %v3111_v30 }
 0x8a5   :  { %3114 = vmatprep.subr.bf16.mxu1 %v3113_v43  ;;  %v1301_v43 = vld [vmem:[#allocation22 + $0x38] sm:$0xff] }
 0x8a6   :  { %v3145_v44 = vpack.c.bf16 %v1301_v43, %v1300_v42  ;;  %v1442_v42 = vld [vmem:[#allocation11 + $0x1e0] sm:$0xff]  ;;  %v1445_v43 = vld [vmem:[#allocation11 + $0x1f8] sm:$0xff] }
 0x8a8   :  { %3116 = vmatpush1.bf16.msra.mxu1 %v3115_v46  ;;  %v1303_v46 = vld [vmem:[#allocation22 + $0x48] sm:$0xff] }
 0x8a9   :  { %3118 = vmatprep.subr.bf16.mxu1 %v3117_v49  ;;  %v3149_v47 = vpack.c.bf16 %v1303_v46, %v1302_v45  ;;  %v1305_v49 = vld [vmem:[#allocation22 + $0x58] sm:$0xff] }
 0x8aa   :  { %v3153_v51 = vpack.c.bf16 %v1305_v49, %v1304_v48 }
 0x8ac   :  { %3120 = vmatpush1.bf16.msra.mxu1 %v3119_v53  ;;  %v1307_v53 = vld [vmem:[#allocation22 + $0x68] sm:$0xff] }
 0x8ad   :  { %3122 = vmatprep.subr.bf16.mxu1 %v3121_v57  ;;  %v3157_v55 = vpack.c.bf16 %v1307_v53, %v1306_v52  ;;  %v1309_v57 = vld [vmem:[#allocation22 + $0x78] sm:$0xff] }
 0x8ae   :  { %v3161_v58 = vpack.c.bf16 %v1309_v57, %v1308_v56  ;;  %v1452_v56 = vld [vmem:[#allocation11 + $0x230] sm:$0xff] }
 0x8af   :  { %v1444_v57 = vld [vmem:[#allocation11 + $0x1f0] sm:$0xff] }
 0x8b0   :  { %3124 = vmatpush1.bf16.msra.mxu1 %v3123_v60 }
 0x8b1   :  { %3126 = vmatprep.subr.bf16.mxu1 %v3125_v2 }
 0x8b4   :  { %3128 = vmatpush1.bf16.msra.mxu1 %v3127_v16 }
 0x8b5   :  { %3130 = vmatprep.subr.bf16.mxu1 %v3129_v6 }
 0x8b8   :  { %3132 = vmatpush1.bf16.msra.mxu1 %v3131_v12 }
 0x92c   :  { %v1132_v31 = vpop.xlane.xlu0 %1131 }
 0x92d   :  { %v1135_v32 = vmul.f32 0.0078125, %v1132_v31  ;;  %v1294_v31 = vld [vmem:[#allocation22] sm:$0xff] }
 0x92f   :  { %v1137_v33 = vsub.f32 %v4260_v8, %v1135_v32  ;;  %v1295_v32 = vld [vmem:[#allocation22 + $0x8] sm:$0xff] }
 0x930   :  { %v1134_v34 = vpop.xlane.xlu0 %1133 }
 0x931   :  { %v1136_v35 = vmul.f32 0.0078125, %v1134_v34  ;;  %v1139_v36 = vmul.f32 %v1137_v33, %v1137_v33  ;;  %v3133_v34 = vpack.c.bf16 %v1295_v32, %v1294_v31  ;;  %v1436_v31 = vld [vmem:[#allocation11 + $0x1b0] sm:$0xff] }
 0x933   :  { %v1138_v38 = vsub.f32 %v4263_v10, %v1136_v35  ;;  %1141 = vadd.xlane.f32.xlu0 %v1139_v36  ;;  %3134 = vmatprep.subr.bf16.mxu0 %v3133_v34  ;;  %v1296_v35 = vld [vmem:[#allocation22 + $0x10] sm:$0xff] }
 0x934   :  { %3136 = vmatpush3.bf16.msra.mxu0 %v3133_v34  ;;  %v1443_v34 = vld [vmem:[#allocation11 + $0x1e8] sm:$0xff] }
 0x935   :  { %v1140_v40 = vmul.f32 %v1138_v38, %v1138_v38 }
 0x937   :  { %1143 = vadd.xlane.f32.xlu0 %v1140_v40  ;;  %v1298_v40 = vld [vmem:[#allocation22 + $0x20] sm:$0xff] }
 0x9c0   :  { %v1142_v13 = vpop.xlane.xlu0 %1141 }
 0x9c1   :  { %v1145_v14 = vmul.f32 0.0078125, %v1142_v13 }
 0x9c3   :  { %v1147_v17 = vadd.f32 1e-05, %v1145_v14 }
 0x9c4   :  { %v1144_v18 = vpop.xlane.xlu0 %1143 }
 0x9c5   :  { %3424 = vrsqrt.f32 %v1147_v17  ;;  %v1146_v19 = vmul.f32 0.0078125, %v1144_v18 }
 0x9c7   :  { %v1148_v22 = vadd.f32 1e-05, %v1146_v19 }
 0x9c9   :  { %3426 = vrsqrt.f32 %v1148_v22 }
 0x9cf   :  { %v3425_v20 = vpop.eup %3424 }
 0x9d0   :  { %v1151_v24 = vmul.f32 %v3425_v20, %v1137_v33  ;;  %v1297_v33 = vld [vmem:[#allocation22 + $0x18] sm:$0xff] }
 0x9d1   :  { %v3137_v36 = vpack.c.bf16 %v1297_v33, %v1296_v35  ;;  %v1431_v20 = vld [vmem:[#allocation11 + $0x188] sm:$0xff]  ;;  %v1446_v35 = vld [vmem:[#allocation11 + $0x200] sm:$0xff] }
 0x9d2   :  { %v1159_v25 = vmul.f32 %v2509_v21, %v1151_v24  ;;  %v1430_v24 = vld [vmem:[#allocation11 + $0x180] sm:$0xff] }
 0x9d3   :  { %v3427_v26 = vpop.eup %3426  ;;  %3138 = vmatprep.subr.bf16.mxu0 %v3137_v36 }
 0x9d4   :  { %v1167_v27 = vadd.f32 %v2510_v23, %v1159_v25  ;;  %v1152_v28 = vmul.f32 %v3427_v26, %v1138_v38  ;;  %3140 = vmatpush3.bf16.msra.mxu0 %v3137_v36  ;;  %v1299_v38 = vld [vmem:[#allocation22 + $0x28] sm:$0xff]  ;;  %v1438_v36 = vld [vmem:[#allocation11 + $0x1c0] sm:$0xff] }
 0x9d5   :  { %v3141_v41 = vpack.c.bf16 %v1299_v38, %v1298_v40  ;;  %v1433_v25 = vld [vmem:[#allocation11 + $0x198] sm:$0xff]  ;;  %v3173_v38 = vpack.c.bf16 %v1446_v35, %v1443_v34  ;;  %v1476_v35 = vld [vmem:[#allocation11 + $0x2f0] sm:$0xff] }
 0x9d6   :  { %1266 = vmatmul.mubr.f32.vlgmr.msra.gmra.mrb[8].mxu1 %v1167_v27  ;;  %v1160_v29 = vmul.f32 %v2509_v21, %v1152_v28  ;;  %v1434_v21 = vld [vmem:[#allocation11 + $0x1a0] sm:$0xff]  ;;  %v1437_v26 = vld [vmem:[#allocation11 + $0x1b8] sm:$0xff]  ;;  %v1440_v27 = vld [vmem:[#allocation11 + $0x1d0] sm:$0xff]  ;;  %v3167_v28 = vpack.c.bf16 %v1433_v25, %v1430_v24 }
 0x9d7   :  { %1271 = vmatprep.mubr.f32.mxu1 %v3867_v9  ;;  %3142 = vmatprep.subr.bf16.mxu0 %v3141_v41  ;;  %v1441_v40 = vld [vmem:[#allocation11 + $0x1d8] sm:$0xff]  ;;  %v1463_v24 = vld [vmem:[#allocation11 + $0x288] sm:$0xff] }
 0x9d8   :  { %v1168_v30 = vadd.f32 %v2510_v23, %v1160_v29  ;;  %3144 = vmatpush3.bf16.msra.mxu0 %v3141_v41  ;;  %v3165_v23 = vpack.c.bf16 %v1434_v21, %v1431_v20  ;;  %v3169_v29 = vpack.c.bf16 %v1440_v27, %v1437_v26  ;;  %v3201_v41 = vpack.c.bf16 %v1441_v40, %v1438_v36  ;;  %v1459_v20 = vld [vmem:[#allocation11 + $0x268] sm:$0xff]  ;;  %v1460_v21 = vld [vmem:[#allocation11 + $0x270] sm:$0xff]  ;;  %v1470_v27 = vld [vmem:[#allocation11 + $0x2c0] sm:$0xff] }
 0x9d9   :  { %3146 = vmatprep.subr.bf16.mxu0 %v3145_v44  ;;  %v3187_v25 = vpack.c.bf16 %v1463_v24, %v1460_v21  ;;  %v1467_v26 = vld [vmem:[#allocation11 + $0x2a8] sm:$0xff]  ;;  %v1473_v34 = vld [vmem:[#allocation11 + $0x2d8] sm:$0xff] }
 0x9da   :  { %1272 = vmatmul.mubr.f32.gmra.mrb[10].mxu1 %v1168_v30  ;;  %v1432_v30 = vld [vmem:[#allocation11 + $0x190] sm:$0xff]  ;;  %3166 = vmatprep.subr.bf16.mxu1 %v3165_v23  ;;  %v3193_v36 = vpack.c.bf16 %v1476_v35, %v1473_v34  ;;  %v1471_v40 = vld [vmem:[#allocation11 + $0x2c8] sm:$0xff] }
 0x9db   :  { %1560 = vmatprep.mubr.f32.mxu1 %v3867_v9  ;;  %3168 = vmatpush1.bf16.msra.mxu1 %v3167_v28  ;;  %v1462_v28 = vld [vmem:[#allocation11 + $0x280] sm:$0xff] }
 0x9dc   :  { %3148 = vmatpush3.bf16.msra.mxu0 %v3145_v44  ;;  %3170 = vmatprep.subr.bf16.mxu1 %v3169_v29  ;;  %v3175_v44 = vpack.c.bf16 %v1445_v43, %v1442_v42  ;;  %v3189_v29 = vpack.c.bf16 %v1470_v27, %v1467_v26 }
 0x9dd   :  { %3150 = vmatprep.subr.bf16.mxu0 %v3149_v47 }
 0x9e0   :  { %3152 = vmatpush3.bf16.msra.mxu0 %v3149_v47 }
 0x9e1   :  { %3154 = vmatprep.subr.bf16.mxu0 %v3153_v51 }
 0x9e4   :  { %3156 = vmatpush3.bf16.msra.mxu0 %v3153_v51 }
 0x9e5   :  { %3158 = vmatprep.subr.bf16.mxu0 %v3157_v55 }
 0x9e8   :  { %3160 = vmatpush3.bf16.msra.mxu0 %v3157_v55  ;;  %v1449_v55 = vld [vmem:[#allocation11 + $0x218] sm:$0xff] }
 0x9e9   :  { %3162 = vmatprep.subr.bf16.mxu0 %v3161_v58 }
 0x9ec   :  { %3164 = vmatpush3.bf16.msra.mxu0 %v3161_v58  ;;  %v3177_v58 = vpack.c.bf16 %v1452_v56, %v1449_v55 }
 0xaa9   :  { %v1267_v59 = vpop.f32.mrb[8].mxu1 }
 0xaaa   :  { %v2511_v60 = vmul.f32 -1.442695, %v1267_v59  ;;  %v1269_v61 = vpop.f32.mrb[9].mxu1 }
 0xaac   :  { %3428 = vpow2.f32 %v2511_v60  ;;  %v1448_v60 = vld [vmem:[#allocation11 + $0x210] sm:$0xff] }
 0xaad   :  { %v1273_v50 = vpop.f32.mrb[10].mxu1 }
 0xaae   :  { %v2512_v0 = vmul.f32 -1.442695, %v1273_v50  ;;  %v1275_v2 = vpop.f32.mrb[11].mxu1 }
 0xab0   :  { %3430 = vpow2.f32 %v2512_v0 }
 0xab6   :  { %v3429_v3 = vpop.eup %3428 }
 0xab7   :  { %v1284_v4 = vadd.f32 1.0, %v3429_v3  ;;  %v1458_v3 = vld [vmem:[#allocation11 + $0x260] sm:$0xff] }
 0xab9   :  { %3432 = vrcp.f32 %v1284_v4  ;;  %v1450_v4 = vld [vmem:[#allocation11 + $0x220] sm:$0xff] }
 0xaba   :  { %v3431_v5 = vpop.eup %3430 }
 0xabb   :  { %v1285_v16 = vadd.f32 1.0, %v3431_v5 }
 0xabd   :  { %3434 = vrcp.f32 %v1285_v16  ;;  %v1453_v16 = vld [vmem:[#allocation11 + $0x238] sm:$0xff] }
 0xac3   :  { %v3433_v6 = vpop.eup %3432 }
 0xac4   :  { %v1290_v7 = vmul.f32 %v3433_v6, %v1267_v59  ;;  %v1447_v59 = vld [vmem:[#allocation11 + $0x208] sm:$0xff]  ;;  %v1454_v6 = vld [vmem:[#allocation11 + $0x240] sm:$0xff] }
 0xac6   :  { %v1292_v11 = vmul.f32 %v1290_v7, %v1269_v61  ;;  %v1451_v61 = vld [vmem:[#allocation11 + $0x228] sm:$0xff]  ;;  %v1457_v7 = vld [vmem:[#allocation11 + $0x258] sm:$0xff] }
 0xac7   :  { %v3435_v12 = vpop.eup %3434  ;;  %v3179_v0 = vpack.c.bf16 %v1451_v61, %v1448_v60  ;;  %v2514_v60 = vld [vmem:[#allocation10 + $0x1] ss:$0 sm:$0xff] }
 0xac8   :  { %v1291_v13 = vmul.f32 %v3435_v12, %v1273_v50  ;;  %2833 = vmatprep.mubr.f32.mxu0 %v1292_v11  ;;  %v3205_v50 = vpack.c.bf16 %v1447_v59, %v1444_v57  ;;  %v3209_v11 = vpack.c.bf16 %v1453_v16, %v1450_v4  ;;  %v3183_v12 = vpack.c.bf16 %v1457_v7, %v1454_v6 }
 0xaca   :  { %v1293_v14 = vmul.f32 %v1291_v13, %v1275_v2  ;;  %v1455_v2 = vld [vmem:[#allocation11 + $0x248] sm:$0xff]  ;;  %v1461_v13 = vld [vmem:[#allocation11 + $0x278] sm:$0xff] }
 0xacb   :  { %v3181_v5 = vpack.c.bf16 %v1458_v3, %v1455_v2 }
 0xacc   :  { %2834 = vmatmul.mubr.f32.vlgmr.msra.gmra.mrb[10].mxu0 %v1293_v14  ;;  %v1464_v14 = vld [vmem:[#allocation11 + $0x290] sm:$0xff] }
 0xb9f   :  { %v2835_v17 = vpop.f32.mrb[10].mxu0 }
 0xba0   :  { %v4271_v18 = vadd.f32 %v2835_v17, %v4263_v10  ;;  %v1376_v19 = vpop.f32.mrb[11].mxu0  ;;  %v1435_v10 = vld [vmem:[#allocation11 + $0x1a8] sm:$0xff]  ;;  %v1456_v17 = vld [vmem:[#allocation11 + $0x250] sm:$0xff] }
 0xba1   :  { %v4274_v22 = vadd.f32 %v1376_v19, %v4260_v8  ;;  %v3197_v32 = vpack.c.bf16 %v1435_v10, %v1432_v30  ;;  %v1439_v8 = vld [vmem:[#allocation11 + $0x1c8] sm:$0xff]  ;;  %v3185_v19 = vpack.c.bf16 %v1464_v14, %v1461_v13  ;;  %v3213_v23 = vpack.c.bf16 %v1459_v20, %v1456_v17  ;;  %v1465_v30 = vld [vmem:[#allocation11 + $0x298] sm:$0xff]  ;;  %v1466_v10 = vld [vmem:[#allocation11 + $0x2a0] sm:$0xff] }
 0xba2   :  { %1393 = vadd.xlane.f32.xlu0 %v4271_v18  ;;  %v3171_v33 = vpack.c.bf16 %v1439_v8, %v1436_v31  ;;  %v1469_v31 = vld [vmem:[#allocation11 + $0x2b8] sm:$0xff] }
 0xba3   :  { %1391 = vadd.xlane.f32.xlu1 %v4274_v22  ;;  %3198 = vmatprep.subr.bf16.mxu0 %v3197_v32  ;;  %v3191_v8 = vpack.c.bf16 %v1469_v31, %v1466_v10 }
 0xba4   :  { %3200 = vmatpush3.bf16.msra.mxu0 %v3197_v32  ;;  %3172 = vmatpush1.bf16.msra.mxu1 %v3171_v33  ;;  %v3217_v32 = vpack.c.bf16 %v1465_v30, %v1462_v28  ;;  %v1468_v33 = vld [vmem:[#allocation11 + $0x2b0] sm:$0xff] }
 0xba5   :  { %3202 = vmatprep.subr.bf16.mxu0 %v3201_v41  ;;  %3174 = vmatprep.subr.bf16.mxu1 %v3173_v38  ;;  %v1472_v38 = vld [vmem:[#allocation11 + $0x2d0] sm:$0xff]  ;;  %v3221_v42 = vpack.c.bf16 %v1471_v40, %v1468_v33 }
 0xba8   :  { %3204 = vmatpush3.bf16.msra.mxu0 %v3201_v41  ;;  %3176 = vmatpush1.bf16.msra.mxu1 %v3175_v44  ;;  %v1475_v41 = vld [vmem:[#allocation11 + $0x2e8] sm:$0xff]  ;;  %v1474_v44 = vld [vmem:[#allocation11 + $0x2e0] sm:$0xff] }
 0xba9   :  { %3178 = vmatprep.subr.bf16.mxu1 %v3177_v58  ;;  %3206 = vmatprep.subr.bf16.mxu0 %v3205_v50  ;;  %v3195_v43 = vpack.c.bf16 %v1475_v41, %v1472_v38  ;;  %v2513_v58 = vld [vmem:[#allocation8 + $0x1] ss:$0 sm:$0xff] }
 0xbac   :  { %3180 = vmatpush1.bf16.msra.mxu1 %v3179_v0  ;;  %3208 = vmatpush3.bf16.msra.mxu0 %v3205_v50 }
 0xbad   :  { %3182 = vmatprep.subr.bf16.mxu1 %v3181_v5  ;;  %3210 = vmatprep.subr.bf16.mxu0 %v3209_v11  ;;  %v1479_v5 = vld [vmem:[#allocation13 + $0x3] sm:$0x7] }
 0xbb0   :  { %3184 = vmatpush1.bf16.msra.mxu1 %v3183_v12  ;;  %3212 = vmatpush3.bf16.msra.mxu0 %v3209_v11  ;;  %v1488_v11 = vrot.slane %v1479_v5, %v455_v54 }
 0xbb1   :  { %3186 = vmatprep.subr.bf16.mxu1 %v3185_v19  ;;  %3214 = vmatprep.subr.bf16.mxu0 %v3213_v23 }
 0xbb4   :  { %3188 = vmatpush1.bf16.msra.mxu1 %v3187_v25  ;;  %3216 = vmatpush3.bf16.msra.mxu0 %v3213_v23 }
 0xbb5   :  { %3190 = vmatprep.subr.bf16.mxu1 %v3189_v29  ;;  %3218 = vmatprep.subr.bf16.mxu0 %v3217_v32 }
 0xbb8   :  { %3192 = vmatpush1.bf16.msra.mxu1 %v3191_v8  ;;  %3220 = vmatpush3.bf16.msra.mxu0 %v3217_v32 }
 0xbb9   :  { %3194 = vmatprep.subr.bf16.mxu1 %v3193_v36  ;;  %3222 = vmatprep.subr.bf16.mxu0 %v3221_v42 }
 0xbbc   :  { %3196 = vmatpush1.bf16.msra.mxu1 %v3195_v43  ;;  %3224 = vmatpush3.bf16.msra.mxu0 %v3221_v42 }
 0xc2f   :  { %v1394_v45 = vpop.xlane.xlu0 %1393 }
 0xc30   :  { %v1392_v46 = vpop.xlane.xlu1 %1391  ;;  %v1396_v47 = vmul.f32 0.0078125, %v1394_v45  ;;  %v1477_v45 = vld [vmem:[#allocation11 + $0x2f8] sm:$0xff] }
 0xc31   :  { %v1395_v48 = vmul.f32 0.0078125, %v1392_v46  ;;  %v3225_v46 = vpack.c.bf16 %v1477_v45, %v1474_v44 }
 0xc32   :  { %v4282_v51 = vsub.f32 %v4271_v18, %v1396_v47 }
 0xc33   :  { %v4279_v49 = vsub.f32 %v4274_v22, %v1395_v48  ;;  %3226 = vmatprep.subr.bf16.mxu0 %v3225_v46 }
 0xc34   :  { %v1400_v53 = vmul.f32 %v4282_v51, %v4282_v51  ;;  %3228 = vmatpush3.bf16.msra.mxu0 %v3225_v46 }
 0xc35   :  { %v1399_v52 = vmul.f32 %v4279_v49, %v4279_v49 }
 0xc37   :  { %1401 = vadd.xlane.f32.xlu0 %v1399_v52 }
 0xc3b   :  { %1403 = vadd.xlane.f32.xlu0 %v1400_v53 }
 0xcc4   :  { %v1402_v47 = vpop.xlane.xlu0 %1401 }
 0xcc5   :  { %v1405_v48 = vmul.f32 0.0078125, %v1402_v47 }
 0xcc7   :  { %v1407_v52 = vadd.f32 1e-05, %v1405_v48 }
 0xcc8   :  { %v1404_v53 = vpop.xlane.xlu0 %1403 }
 0xcc9   :  { %3436 = vrsqrt.f32 %v1407_v52  ;;  %v1406_v55 = vmul.f32 0.0078125, %v1404_v53 }
 0xccb   :  { %v1408_v56 = vadd.f32 1e-05, %v1406_v55 }
 0xccd   :  { %3438 = vrsqrt.f32 %v1408_v56 }
 0xcd3   :  { %v3437_v57 = vpop.eup %3436 }
 0xcd4   :  { %v1411_v59 = vmul.f32 %v3437_v57, %v4279_v49  ;;  %v1484_v49 = vrot.slane %v1479_v5, %v451_v63 }
 0xcd6   :  { %v1419_v61 = vmul.f32 %v2513_v58, %v1411_v59 }
 0xcd7   :  { %v3439_v50 = vpop.eup %3438 }
 0xcd8   :  { %v1427_v0 = vadd.f32 %v2514_v60, %v1419_v61  ;;  %v1412_v2 = vmul.f32 %v3439_v50, %v4282_v51  ;;  %v1492_v51 = vrot.slane %v1479_v5, %v459_v1 }
 0xcda   :  { %1561 = vmatmul.mubr.f32.vlgmr.msra.gmra.mrb[12].mxu1 %v1427_v0  ;;  %2868 = vmatprep.mubr.f32.mxu0 %v1427_v0  ;;  %v1420_v3 = vmul.f32 %v2513_v58, %v1412_v2 }
 0xcdb   :  { %1566 = vmatprep.mubr.f32.mxu1 %v3867_v9 }
 0xcdc   :  { %v1428_v4 = vadd.f32 %v2514_v60, %v1420_v3 }
 0xcde   :  { %1567 = vmatmul.mubr.f32.gmra.mrb[14].mxu1 %v1428_v4  ;;  %2869 = vmatmul.mubr.f32.vlgmr.msra.gmra.mrb[12].mxu0 %v1428_v4 }
 0xcdf   :  { %2301 = vmatprep.mubr.f32.mxu0 %v3867_v9 }
 0xdad   :  { %v1562_v16 = vpop.f32.mrb[12].mxu1 }
 0xdae   :  { %v1563_v6 = vadd.f32 %v1562_v16, %v1484_v49  ;;  %v1564_v7 = vpop.f32.mrb[13].mxu1 }
 0xdaf   :  { %v1565_v20 = vadd.f32 %v1564_v7, %v1488_v11 }
 0xdb0   :  { %1842 = vrot.lane.b32.xlu1 %v1563_v6, %s3868_s14  ;;  %2875 = vmatprep.mubr.msk.f32.mxu1 %vm274_vm0, %v1563_v6 }
 0xdb1   :  { %v1568_v12 = vpop.f32.mrb[14].mxu1  ;;  %v2870_v13 = vpop.f32.mrb[12].mxu0 }
 0xdb2   :  { %v1645_v14 = vadd.f32 %v2870_v13, %v1492_v51  ;;  %v1570_v17 = vpop.f32.mrb[15].mxu1  ;;  %v1639_v19 = vpop.f32.mrb[13].mxu0  ;;  %v1569_v62 = vadd.f32 %v1568_v12, %v1484_v49  ;;  %v2059_v12 = vld [vmem:[#allocation14 + $0x80] sm:$0xff]  ;;  %v2060_v13 = vld [vmem:[#allocation14 + $0x88] sm:$0xff] }
 0xdb3   :  { %v1571_v63 = vadd.f32 %v1570_v17, %v1488_v11  ;;  %v1640_v21 = vadd.f32 %v1639_v19, %v1492_v51  ;;  %v3249_v17 = vpack.c.bf16 %v2060_v13, %v2059_v12  ;;  %v2062_v19 = vld [vmem:[#allocation14 + $0x98] sm:$0xff] }
 0xdb4   :  { %v2216_v12 = vld [vmem:[#allocation20 + $0x158] sm:$0xff] }
 0xdb5   :  { %v3389_v24 = vpack.i.bf16 %v1571_v63, %v1565_v20  ;;  %v3229_v23 = vpack.c.bf16 %v1571_v63, %v1565_v20  ;;  %v3394_v25 = vpack.i.bf16 %v1645_v14, %v1640_v21  ;;  %v3235_v26 = vpack.c.bf16 %v1645_v14, %v1640_v21  ;;  %v2061_v14 = vld [vmem:[#allocation14 + $0x90] sm:$0xff]  ;;  %v2063_v63 = vld [vmem:[#allocation14 + $0xa0] sm:$0xff]  ;;  %v2064_v21 = vld [vmem:[#allocation14 + $0xa8] sm:$0xff] }
 0xdb6   :  { %v3253_v20 = vpack.c.bf16 %v2062_v19, %v2061_v14  ;;  %v2215_v19 = vld [vmem:[#allocation20 + $0x150] sm:$0xff] }
 0xdb7   :  { %3231 = vmatprep.subr.msk.bf16.mxu1 %vm4215_vm3, %v3229_v23 }
 0xdb8   :  { %3234 = vmatpush3.bf16.xpose.msk.msra.mxu1 %vm4215_vm3, %v3229_v23  ;;  %v2065_v23 = vld [vmem:[#allocation14 + $0xb0] sm:$0xff] }
 0xdb9   :  { %3236 = vmatprep.subr.bf16.mxu1 %v3235_v26 }
 0xdbf   :  { %2876 = vmatmul.mubr.msk.f32.vlgmr.msra.gmra.mrb[16].mxu1 %vm274_vm0, %v1569_v62 }
 0xdc0   :  { %3238 = vmatpush3.bf16.msra.mxu1 %v3235_v26 }
 0xe22   :  { %v1843_v45 = vpop.permute.xlu1 %1842 }
 0xe92   :  { %v2877_v1 = vpop.f32.mrb[16].mxu1 }
 0xe93   :  { %v1736_v54 = vmul.f32 0.125, %v2877_v1  ;;  %v1726_v27 = vpop.f32.mrb[17].mxu1  ;;  %v2068_v1 = vld [vmem:[#allocation14 + $0xc8] sm:$0xff] }
 0xe94   :  { %v1735_v28 = vmul.f32 0.125, %v1726_v27  ;;  %v2069_v27 = vld [vmem:[#allocation14 + $0xd0] sm:$0xff] }
 0xe95   :  { %v1738_v29 = vadd.f32 %v1736_v54, %v4233_v37 }
 0xe96   :  { %v1737_v10 = vadd.f32 %v1735_v28, %v4236_v39  ;;  %v2070_v28 = vld [vmem:[#allocation14 + $0xd8] sm:$0xff] }
 0xe97   :  { %v1742_v30 = vsel %vm707_vm4, %v1738_v29, -inf }
 0xe98   :  { %1743 = vmax.xlane.f32.xlu0 %v1742_v30  ;;  %v1739_v31 = vsel %vm707_vm4, %v1737_v10, -inf  ;;  %v2071_v30 = vld [vmem:[#allocation14 + $0xe0] sm:$0xff] }
 0xe9c   :  { %1740 = vmax.xlane.f32.xlu0 %v1739_v31 }
 0xeb2   :  { %3390 = vrot.lane.b32.xlu0 %v3389_v24, %s3868_s14  ;;  %v3257_v24 = vpack.c.bf16 %v2064_v21, %v2063_v63 }
 0xeb6   :  { %1844 = vrot.lane.b32.xlu0 %v1569_v62, %s3868_s14  ;;  %v2067_v62 = vld [vmem:[#allocation14 + $0xc0] sm:$0xff] }
 0xeb7   :  { %v3265_v54 = vpack.c.bf16 %v2068_v1, %v2067_v62 }
 0xf25   :  { %v1744_v32 = vpop.xlane.xlu0 %1743 }
 0xf26   :  { %v1746_v8 = vsub.f32 %v1738_v29, %v1744_v32  ;;  %v3269_v29 = vpack.c.bf16 %v2070_v28, %v2069_v27  ;;  %v2220_v27 = vld [vmem:[#allocation20 + $0x178] sm:$0xff] }
 0xf28   :  { %v1749_v33 = vmul.f32 1.442695, %v1746_v8 }
 0xf29   :  { %v1741_v34 = vpop.xlane.xlu0 %1740 }
 0xf2a   :  { %v1745_v35 = vsub.f32 %v1737_v10, %v1741_v34  ;;  %v2072_v10 = vld [vmem:[#allocation14 + $0xe8] sm:$0xff]  ;;  %v2073_v34 = vld [vmem:[#allocation14 + $0xf0] sm:$0xff] }
 0xf2b   :  { %v3273_v31 = vpack.c.bf16 %v2072_v10, %v2071_v30  ;;  %v2219_v30 = vld [vmem:[#allocation20 + $0x170] sm:$0xff] }
 0xf2c   :  { %v1747_v36 = vmul.f32 1.442695, %v1745_v35  ;;  %v2074_v35 = vld [vmem:[#allocation14 + $0xf8] sm:$0xff] }
 0xf2d   :  { %v3391_v40 = vpop.permute.xlu0 %3390 }
 0xf2e   :  { %3440 = vpow2.f32 %v1747_v36  ;;  %v3393_v38 = vunpack.i.h.bf16 %v3391_v40  ;;  %v3392_v41 = vunpack.i.l.bf16 %v3391_v40 }
 0xf2f   :  { %3442 = vpow2.f32 %v1749_v33  ;;  %v3277_v33 = vpack.c.bf16 %v2074_v35, %v2073_v34  ;;  %v2221_v34 = vld [vmem:[#allocation20 + $0x180] sm:$0xff]  ;;  %v2223_v35 = vld [vmem:[#allocation20 + $0x190] sm:$0xff] }
 0xf30   :  { %v3239_v42 = vpack.c.bf16 %v3393_v38, %v3392_v41 }
 0xf31   :  { %v1845_v46 = vpop.permute.xlu0 %1844 }
 0xf32   :  { %3241 = vmatprep.subr.msk.bf16.mxu1 %vm4215_vm3, %v3239_v42 }
 0xf38   :  { %v3441_v43 = vpop.eup %3440 }
 0xf39   :  { %v3443_v44 = vpop.eup %3442  ;;  %2882 = vmatprep.mubr.msk.f32.mxu1 %vm707_vm4, %v3441_v43  ;;  %v1751_v11 = vsel %vm707_vm4, %v3441_v43, 0.0 }
 0xf3a   :  { %2883 = vmatmul.mubr.msk.f32.vlgmr.msra.gmra.mrb[18].mxu1 %vm707_vm4, %v3443_v44  ;;  %v1754_v60 = vsel %vm707_vm4, %v3443_v44, 0.0 }
 0xf3b   :  { %3244 = vmatpush3.bf16.xpose.msk.msra.mxu1 %vm4215_vm3, %v3239_v42  ;;  %2889 = vmatprep.mubr.msk.f32.mxu1 %vm274_vm0, %v1843_v45 }
 0xf42   :  { %2890 = vmatmul.mubr.msk.f32.vlgmr.msra.gmra.mrb[20].mxu1 %vm274_vm0, %v1845_v46 }
0x100d   :  { %v4319_v47 = vpop.f32.mrb[18].mxu1 }
0x100e   :  { %v4321_v48 = vpop.f32.mrb[19].mxu1 }
0x1015   :  { %v2891_v52 = vpop.f32.mrb[20].mxu1 }
0x1016   :  { %v1934_v53 = vmul.f32 0.125, %v2891_v52  ;;  %v1924_v55 = vpop.f32.mrb[21].mxu1 }
0x1017   :  { %v1933_v56 = vmul.f32 0.125, %v1924_v55 }
0x1018   :  { %v1936_v57 = vadd.f32 %v1934_v53, %v4233_v37 }
0x1019   :  { %v1935_v58 = vadd.f32 %v1933_v56, %v4236_v39 }
0x101a   :  { %v1940_v15 = vsel %vm707_vm4, %v1936_v57, -inf }
0x101b   :  { %1941 = vmax.xlane.f32.xlu1 %v1940_v15  ;;  %v1937_v59 = vsel %vm707_vm4, %v1935_v58, -inf }
0x101c   :  { %1938 = vmax.xlane.f32.xlu0 %v1937_v59 }
0x1032   :  { %3395 = vrot.lane.b32.xlu0 %v3394_v25, %s3868_s14  ;;  %v2066_v25 = vld [vmem:[#allocation14 + $0xb8] sm:$0xff] }
0x1033   :  { %v3261_v26 = vpack.c.bf16 %v2066_v25, %v2065_v23 }
0x1051   :  { %1755 = vadd.xlane.f32.xlu0 %v1754_v60 }
0x10a8   :  { %v1942_v61 = vpop.xlane.xlu1 %1941 }
0x10a9   :  { %v1944_v50 = vsub.f32 %v1936_v57, %v1942_v61  ;;  %v1939_v0 = vpop.xlane.xlu0 %1938 }
0x10aa   :  { %v1943_v2 = vsub.f32 %v1935_v58, %v1939_v0 }
0x10ab   :  { %v1947_v3 = vmul.f32 1.442695, %v1944_v50  ;;  %v2527_v50 = vld [vmem:[#allocation16 + $0x1] ss:$0 sm:$0xff] }
0x10ac   :  { %v1945_v4 = vmul.f32 1.442695, %v1943_v2 }
0x10ad   :  { %v3396_v37 = vpop.permute.xlu0 %3395 }
0x10ae   :  { %3444 = vpow2.f32 %v1945_v4  ;;  %v3398_v39 = vunpack.i.h.bf16 %v3396_v37  ;;  %v3397_v5 = vunpack.i.l.bf16 %v3396_v37 }
0x10af   :  { %3446 = vpow2.f32 %v1947_v3 }
0x10b0   :  { %v3245_v49 = vpack.c.bf16 %v3398_v39, %v3397_v5  ;;  %v2205_v39 = vld [vmem:[#allocation20 + $0x100] sm:$0xff] }
0x10b2   :  { %3246 = vmatprep.subr.bf16.mxu1 %v3245_v49 }
0x10b3   :  { %3248 = vmatpush3.bf16.msra.mxu1 %v3245_v49  ;;  %v2207_v49 = vld [vmem:[#allocation20 + $0x110] sm:$0xff] }
0x10b4   :  { %3250 = vmatprep.subr.bf16.mxu1 %v3249_v17 }
0x10b8   :  { %v3445_v16 = vpop.eup %3444 }
0x10b9   :  { %v3447_v6 = vpop.eup %3446  ;;  %2896 = vmatprep.mubr.msk.f32.mxu1 %vm707_vm4, %v3445_v16  ;;  %v1949_v7 = vsel %vm707_vm4, %v3445_v16, 0.0  ;;  %v2210_v16 = vld [vmem:[#allocation20 + $0x128] sm:$0xff] }
0x10ba   :  { %1950 = vadd.xlane.f32.xlu1 %v1949_v7  ;;  %2897 = vmatmul.mubr.msk.f32.vlgmr.msra.gmra.mrb[22].mxu1 %vm707_vm4, %v3447_v6  ;;  %v1952_v51 = vsel %vm707_vm4, %v3447_v6, 0.0  ;;  %v2212_v6 = vld [vmem:[#allocation20 + $0x138] sm:$0xff]  ;;  %v3283_v7 = vpack.c.bf16 %v2207_v49, %v2205_v39 }
0x10bb   :  { %3252 = vmatpush3.bf16.msra.mxu1 %v3249_v17  ;;  %v2213_v17 = vld [vmem:[#allocation20 + $0x140] sm:$0xff]  ;;  %v2528_v39 = vld [vmem:[#allocation17 + $0x1] ss:$0 sm:$0xff]  ;;  %v2529_v49 = vld [vmem:[#allocation19 + $0x1] ss:$0 sm:$0xff] }
0x10bc   :  { %3254 = vmatprep.subr.bf16.mxu1 %v3253_v20 }
0x10be   :  { %1953 = vadd.xlane.f32.xlu1 %v1952_v51  ;;  %v2209_v51 = vld [vmem:[#allocation20 + $0x120] sm:$0xff] }
0x10bf   :  { %3256 = vmatpush3.bf16.msra.mxu1 %v3253_v20  ;;  %v3291_v20 = vpack.c.bf16 %v2215_v19, %v2213_v17  ;;  %v2334_v17 = vld [vmem:[#allocation22 + $0x98] sm:$0xff] }
0x10c0   :  { %3258 = vmatprep.subr.bf16.mxu1 %v3257_v24 }
0x10c2   :  { %1752 = vadd.xlane.f32.xlu1 %v1751_v11  ;;  %v2211_v11 = vld [vmem:[#allocation20 + $0x130] sm:$0xff] }
0x10c3   :  { %3260 = vmatpush3.bf16.msra.mxu1 %v3257_v24  ;;  %v3287_v13 = vpack.c.bf16 %v2211_v11, %v2209_v51 }
0x10c4   :  { %3262 = vmatprep.subr.bf16.mxu1 %v3261_v26 }
0x10c7   :  { %3264 = vmatpush3.bf16.msra.mxu1 %v3261_v26 }
0x10c8   :  { %3266 = vmatprep.subr.bf16.mxu1 %v3265_v54 }
0x10cb   :  { %3268 = vmatpush3.bf16.msra.mxu1 %v3265_v54  ;;  %v2218_v54 = vld [vmem:[#allocation20 + $0x168] sm:$0xff] }
0x10cc   :  { %3270 = vmatprep.subr.bf16.mxu1 %v3269_v29  ;;  %v3293_v28 = vpack.c.bf16 %v2220_v27, %v2218_v54  ;;  %v2342_v54 = vld [vmem:[#allocation22 + $0xd8] sm:$0xff] }
0x10cf   :  { %3272 = vmatpush3.bf16.msra.mxu1 %v3269_v29  ;;  %v2217_v29 = vld [vmem:[#allocation20 + $0x160] sm:$0xff] }
0x10d0   :  { %3274 = vmatprep.subr.bf16.mxu1 %v3273_v31  ;;  %v3295_v10 = vpack.c.bf16 %v2219_v30, %v2217_v29  ;;  %v2344_v29 = vld [vmem:[#allocation22 + $0xe8] sm:$0xff] }
0x10d3   :  { %3276 = vmatpush3.bf16.msra.mxu1 %v3273_v31  ;;  %v2222_v31 = vld [vmem:[#allocation20 + $0x188] sm:$0xff] }
0x10d4   :  { %3278 = vmatprep.subr.bf16.mxu1 %v3277_v33 }
0x10d7   :  { %3280 = vmatpush3.bf16.msra.mxu1 %v3277_v33  ;;  %v3299_v33 = vpack.c.bf16 %v2223_v35, %v2221_v34 }
0x10de   :  { %v1756_v45 = vpop.xlane.xlu0 %1755 }
0x1147   :  { %v1951_v32 = vpop.xlane.xlu1 %1950 }
0x114b   :  { %v1954_v8 = vpop.xlane.xlu1 %1953 }
0x114c   :  { %3448 = vrcp.f32 %v1954_v8 }
0x114d   :  { %3450 = vrcp.f32 %v1951_v32  ;;  %v2224_v32 = vld [vmem:[#allocation20 + $0x198] sm:$0xff] }
0x114e   :  { %3452 = vrcp.f32 %v1756_v45  ;;  %v3297_v8 = vpack.c.bf16 %v2224_v32, %v2222_v31  ;;  %v2232_v45 = vld [vmem:[#allocation20 + $0x1d8] sm:$0xff] }
0x114f   :  { %v1753_v46 = vpop.xlane.xlu1 %1752  ;;  %v2346_v31 = vld [vmem:[#allocation22 + $0xf8] sm:$0xff] }
0x1150   :  { %3454 = vrcp.f32 %v1753_v46  ;;  %v2229_v46 = vld [vmem:[#allocation20 + $0x1c0] sm:$0xff] }
0x1156   :  { %v3449_v36 = vpop.eup %3448 }
0x1157   :  { %v3451_v38 = vpop.eup %3450 }
0x1158   :  { %v3453_v52 = vpop.eup %3452 }
0x1159   :  { %v1841_v15 = vmul.f32 %v3453_v52, %v4319_v47  ;;  %v2206_v47 = vld [vmem:[#allocation20 + $0x108] sm:$0xff] }
0x115a   :  { %v3455_v53 = vpop.eup %3454 }
0x115b   :  { %v1839_v58 = vmul.f32 %v3455_v53, %v4321_v48  ;;  %v2208_v48 = vld [vmem:[#allocation20 + $0x118] sm:$0xff]  ;;  %v2231_v53 = vld [vmem:[#allocation20 + $0x1d0] sm:$0xff] }
0x115c   :  { %v3281_v5 = vpack.c.bf16 %v2208_v48, %v2206_v47 }
0x115e   :  { %3282 = vmatprep.subr.bf16.mxu0 %v3281_v5 }
0x115f   :  { %3284 = vmatpush1.bf16.msra.mxu0 %v3283_v7 }
0x118d   :  { %v2898_v40 = vpop.f32.mrb[22].mxu1 }
0x118e   :  { %v2047_v41 = vmul.f32 %v3449_v36, %v2898_v40  ;;  %v2035_v42 = vpop.f32.mrb[23].mxu1  ;;  %v2226_v36 = vld [vmem:[#allocation20 + $0x1a8] sm:$0xff]  ;;  %v2228_v40 = vld [vmem:[#allocation20 + $0x1b8] sm:$0xff] }
0x118f   :  { %v2045_v43 = vmul.f32 %v3451_v38, %v2035_v42  ;;  %v3301_v38 = vpack.c.bf16 %v2228_v40, %v2226_v36  ;;  %v2227_v42 = vld [vmem:[#allocation20 + $0x1b0] sm:$0xff] }
0x1191   :  { %v3399_v44 = vpack.i.bf16 %v2047_v41, %v2045_v43  ;;  %v2225_v41 = vld [vmem:[#allocation20 + $0x1a0] sm:$0xff] }
0x1192   :  { %v3303_v43 = vpack.c.bf16 %v2227_v42, %v2225_v41 }
0x1193   :  { %3400 = vrot.lane.b32.xlu1 %v3399_v44, %s3868_s14  ;;  %v2230_v44 = vld [vmem:[#allocation20 + $0x1c8] sm:$0xff] }
0x1194   :  { %v3305_v52 = vpack.c.bf16 %v2232_v45, %v2230_v44 }
0x1205   :  { %v3401_v55 = vpop.permute.xlu1 %3400 }
0x1206   :  { %v3403_v56 = vunpack.i.h.bf16 %v3401_v55  ;;  %v3402_v57 = vunpack.i.l.bf16 %v3401_v55  ;;  %v2234_v55 = vld [vmem:[#allocation20 + $0x1e8] sm:$0xff] }
0x1208   :  { %v2056_v59 = vsel %vm274_vm0, %v1839_v58, %v3402_v57  ;;  %v2057_v60 = vsel %vm274_vm0, %v1841_v15, %v3403_v56  ;;  %v2236_v56 = vld [vmem:[#allocation20 + $0x1f8] sm:$0xff]  ;;  %v3307_v57 = vpack.c.bf16 %v2231_v53, %v2229_v46  ;;  %v2233_v15 = vld [vmem:[#allocation20 + $0x1e0] sm:$0xff] }
0x1209   :  { %2931 = vmatprep.mubr.f32.mxu1 %v2056_v59  ;;  %v3309_v58 = vpack.c.bf16 %v2236_v56, %v2234_v55  ;;  %v2235_v59 = vld [vmem:[#allocation20 + $0x1f0] sm:$0xff] }
0x120a   :  { %2932 = vmatmul.mubr.f32.vlgmr.msra.gmra.mrb[24].mxu1 %v2057_v60  ;;  %v3311_v60 = vpack.c.bf16 %v2235_v59, %v2233_v15 }
0x12dd   :  { %v2933_v61 = vpop.f32.mrb[24].mxu1 }
0x12de   :  { %v2151_v0 = vadd.f32 %v2933_v61, %v4271_v18  ;;  %v2141_v2 = vpop.f32.mrb[25].mxu1  ;;  %v3285_v18 = vpack.c.bf16 %v2212_v6, %v2210_v16 }
0x12df   :  { %v2150_v3 = vadd.f32 %v2141_v2, %v4274_v22  ;;  %v2214_v22 = vld [vmem:[#allocation20 + $0x148] sm:$0xff] }
0x12e0   :  { %v4341_v4 = vadd.f32 %v2527_v50, %v2151_v0  ;;  %3286 = vmatprep.subr.bf16.mxu0 %v3285_v18  ;;  %v3289_v14 = vpack.c.bf16 %v2216_v12, %v2214_v22  ;;  %v2331_v22 = vld [vmem:[#allocation22 + $0x80] sm:$0xff]  ;;  %v2332_v12 = vld [vmem:[#allocation22 + $0x88] sm:$0xff] }
0x12e1   :  { %v4343_v37 = vadd.f32 %v2527_v50, %v2150_v3  ;;  %3288 = vmatpush1.bf16.msra.mxu0 %v3287_v13  ;;  %v3313_v13 = vpack.c.bf16 %v2332_v12, %v2331_v22 }
0x12e2   :  { %2168 = vadd.xlane.f32.xlu0 %v4341_v4  ;;  %3290 = vmatprep.subr.bf16.mxu0 %v3289_v14  ;;  %v2333_v14 = vld [vmem:[#allocation22 + $0x90] sm:$0xff] }
0x12e3   :  { %2166 = vadd.xlane.f32.xlu1 %v4343_v37  ;;  %3314 = vmatprep.subr.bf16.mxu1 %v3313_v13  ;;  %v3317_v19 = vpack.c.bf16 %v2334_v17, %v2333_v14 }
0x12e4   :  { %3316 = vmatpush3.bf16.msra.mxu1 %v3313_v13 }
0x12e5   :  { %3292 = vmatpush1.bf16.msra.mxu0 %v3291_v20  ;;  %3318 = vmatprep.subr.bf16.mxu1 %v3317_v19  ;;  %v2335_v20 = vld [vmem:[#allocation22 + $0xa0] sm:$0xff] }
0x12e6   :  { %3294 = vmatprep.subr.bf16.mxu0 %v3293_v28  ;;  %v2343_v28 = vld [vmem:[#allocation22 + $0xe0] sm:$0xff] }
0x12e7   :  { %v3337_v30 = vpack.c.bf16 %v2344_v29, %v2343_v28 }
0x12e8   :  { %3320 = vmatpush3.bf16.msra.mxu1 %v3317_v19 }
0x12e9   :  { %3296 = vmatpush1.bf16.msra.mxu0 %v3295_v10  ;;  %v2345_v10 = vld [vmem:[#allocation22 + $0xf0] sm:$0xff] }
0x12ea   :  { %3298 = vmatprep.subr.bf16.mxu0 %v3297_v8  ;;  %v3341_v32 = vpack.c.bf16 %v2346_v31, %v2345_v10 }
0x12ed   :  { %3300 = vmatpush1.bf16.msra.mxu0 %v3299_v33 }
0x12ee   :  { %3302 = vmatprep.subr.bf16.mxu0 %v3301_v38 }
0x12f1   :  { %3304 = vmatpush1.bf16.msra.mxu0 %v3303_v43 }
0x12f2   :  { %3306 = vmatprep.subr.bf16.mxu0 %v3305_v52 }
0x12f5   :  { %3308 = vmatpush1.bf16.msra.mxu0 %v3307_v57 }
0x12f6   :  { %3310 = vmatprep.subr.bf16.mxu0 %v3309_v58 }
0x12f9   :  { %3312 = vmatpush1.bf16.msra.mxu0 %v3311_v60 }
0x136f   :  { %v2169_v63 = vpop.xlane.xlu0 %2168 }
0x1370   :  { %v2167_v21 = vpop.xlane.xlu1 %2166  ;;  %v2171_v24 = vmul.f32 0.0078125, %v2169_v63  ;;  %v2336_v63 = vld [vmem:[#allocation22 + $0xa8] sm:$0xff] }
0x1371   :  { %v2170_v23 = vmul.f32 0.0078125, %v2167_v21  ;;  %v3321_v21 = vpack.c.bf16 %v2336_v63, %v2335_v20 }
0x1372   :  { %v2173_v26 = vsub.f32 %v4341_v4, %v2171_v24  ;;  %v2337_v24 = vld [vmem:[#allocation22 + $0xb0] sm:$0xff] }
0x1373   :  { %v2172_v25 = vsub.f32 %v4343_v37, %v2170_v23  ;;  %3322 = vmatprep.subr.bf16.mxu1 %v3321_v21  ;;  %v2338_v23 = vld [vmem:[#allocation22 + $0xb8] sm:$0xff] }
0x1374   :  { %v2175_v1 = vmul.f32 %v2173_v26, %v2173_v26  ;;  %3324 = vmatpush3.bf16.msra.mxu1 %v3321_v21 }
0x1375   :  { %v2174_v62 = vmul.f32 %v2172_v25, %v2172_v25 }
0x1377   :  { %2176 = vadd.xlane.f32.xlu0 %v2174_v62 }
0x137b   :  { %2178 = vadd.xlane.f32.xlu0 %v2175_v1  ;;  %v2341_v1 = vld [vmem:[#allocation22 + $0xd0] sm:$0xff] }
0x137c   :  { %v3333_v27 = vpack.c.bf16 %v2342_v54, %v2341_v1 }
0x1404   :  { %v2177_v61 = vpop.xlane.xlu0 %2176 }
0x1405   :  { %v2180_v50 = vmul.f32 0.0078125, %v2177_v61 }
0x1407   :  { %v2182_v0 = vadd.f32 1e-05, %v2180_v50 }
0x1408   :  { %v2179_v2 = vpop.xlane.xlu0 %2178 }
0x1409   :  { %3456 = vrsqrt.f32 %v2182_v0  ;;  %v2181_v3 = vmul.f32 0.0078125, %v2179_v2 }
0x140b   :  { %v2183_v47 = vadd.f32 1e-05, %v2181_v3 }
0x140d   :  { %3458 = vrsqrt.f32 %v2183_v47 }
0x1413   :  { %v3457_v48 = vpop.eup %3456 }
0x1414   :  { %v2186_v5 = vmul.f32 %v3457_v48, %v2172_v25  ;;  %v2339_v25 = vld [vmem:[#allocation22 + $0xc0] sm:$0xff] }
0x1416   :  { %v2194_v16 = vmul.f32 %v2528_v39, %v2186_v5 }
0x1417   :  { %v3459_v6 = vpop.eup %3458 }
0x1418   :  { %v2202_v7 = vadd.f32 %v2529_v49, %v2194_v16  ;;  %v2187_v18 = vmul.f32 %v3459_v6, %v2173_v26  ;;  %v2340_v26 = vld [vmem:[#allocation22 + $0xc8] sm:$0xff]  ;;  %v2532_v6 = vld [vmem:[#allocation23] ss:$0 sm:$0xff] }
0x1419   :  { %v3329_v62 = vpack.c.bf16 %v2340_v26, %v2339_v25 }
0x141a   :  { %2302 = vmatmul.mubr.f32.vlgmr.msra.gmra.mrb[14].mxu0 %v2202_v7  ;;  %v2195_v51 = vmul.f32 %v2528_v39, %v2187_v18  ;;  %v2533_v18 = vld [vmem:[#allocation25] ss:$0 sm:$0xff] }
0x141b   :  { %2307 = vmatprep.mubr.f32.mxu0 %v3867_v9  ;;  %v3325_v9 = vpack.c.bf16 %v2338_v23, %v2337_v24 }
0x141c   :  { %v2203_v11 = vadd.f32 %v2529_v49, %v2195_v51 }
0x141d   :  { %3326 = vmatprep.subr.bf16.mxu1 %v3325_v9 }
0x141e   :  { %2308 = vmatmul.mubr.f32.gmra.mrb[16].mxu0 %v2203_v11  ;;  %3328 = vmatpush3.bf16.msra.mxu1 %v3325_v9 }
0x141f   :  { %3330 = vmatprep.subr.bf16.mxu1 %v3329_v62 }
0x1422   :  { %3332 = vmatpush3.bf16.msra.mxu1 %v3329_v62 }
0x1423   :  { %3334 = vmatprep.subr.bf16.mxu1 %v3333_v27 }
0x1426   :  { %3336 = vmatpush3.bf16.msra.mxu1 %v3333_v27 }
0x1427   :  { %3338 = vmatprep.subr.bf16.mxu1 %v3337_v30 }
0x142a   :  { %3340 = vmatpush3.bf16.msra.mxu1 %v3337_v30 }
0x142b   :  { %3342 = vmatprep.subr.bf16.mxu1 %v3341_v32 }
0x142e   :  { %3344 = vmatpush3.bf16.msra.mxu1 %v3341_v32 }
0x14ed   :  { %v2303_v8 = vpop.f32.mrb[14].mxu0 }
0x14ee   :  { %v2530_v34 = vmul.f32 -1.442695, %v2303_v8  ;;  %v2305_v35 = vpop.f32.mrb[15].mxu0 }
0x14f0   :  { %3460 = vpow2.f32 %v2530_v34 }
0x14f1   :  { %v2309_v33 = vpop.f32.mrb[16].mxu0 }
0x14f2   :  { %v2531_v36 = vmul.f32 -1.442695, %v2309_v33  ;;  %v2311_v40 = vpop.f32.mrb[17].mxu0 }
0x14f4   :  { %3462 = vpow2.f32 %v2531_v36 }
0x14fa   :  { %v3461_v38 = vpop.eup %3460 }
0x14fb   :  { %v2320_v41 = vadd.f32 1.0, %v3461_v38 }
0x14fd   :  { %3464 = vrcp.f32 %v2320_v41 }
0x14fe   :  { %v3463_v42 = vpop.eup %3462 }
0x14ff   :  { %v2321_v43 = vadd.f32 1.0, %v3463_v42 }
0x1501   :  { %3466 = vrcp.f32 %v2321_v43 }
0x1507   :  { %v3465_v44 = vpop.eup %3464 }
0x1508   :  { %v2326_v45 = vmul.f32 %v3465_v44, %v2303_v8 }
0x150a   :  { %v2328_v46 = vmul.f32 %v2326_v45, %v2305_v35 }
0x150b   :  { %v3467_v52 = vpop.eup %3466 }
0x150c   :  { %v2327_v53 = vmul.f32 %v3467_v52, %v2309_v33  ;;  %2966 = vmatprep.mubr.f32.mxu1 %v2328_v46 }
0x150e   :  { %v2329_v55 = vmul.f32 %v2327_v53, %v2311_v40 }
0x1510   :  { %2967 = vmatmul.mubr.f32.vlgmr.msra.gmra.mrb[26].mxu1 %v2329_v55 }
0x15e3   :  { %v2968_v56 = vpop.f32.mrb[26].mxu1 }
0x15e4   :  { %v2413_v57 = vpop.f32.mrb[27].mxu1  ;;  %v2423_v15 = vadd.f32 %v2968_v56, %v4341_v4 }
0x15e5   :  { %v2422_v58 = vadd.f32 %v2413_v57, %v4343_v37 }
0x15e7   :  { %2426 = vadd.xlane.f32.xlu0 %v2422_v58 }
0x15eb   :  { %2428 = vadd.xlane.f32.xlu0 %v2423_v15 }
0x1674   :  { %v2427_v59 = vpop.xlane.xlu0 %2426 }
0x1675   :  { %v2430_v60 = vmul.f32 0.0078125, %v2427_v59 }
0x1677   :  { %v2432_v61 = vsub.f32 %v2422_v58, %v2430_v60 }
0x1678   :  { %v2429_v50 = vpop.xlane.xlu0 %2428 }
0x1679   :  { %v2431_v0 = vmul.f32 0.0078125, %v2429_v50  ;;  %v2434_v2 = vmul.f32 %v2432_v61, %v2432_v61 }
0x167b   :  { %v2433_v3 = vsub.f32 %v2423_v15, %v2431_v0  ;;  %2436 = vadd.xlane.f32.xlu0 %v2434_v2 }
0x167d   :  { %v2435_v47 = vmul.f32 %v2433_v3, %v2433_v3 }
0x167f   :  { %2438 = vadd.xlane.f32.xlu1 %v2435_v47 }
0x1708   :  { %v2437_v48 = vpop.xlane.xlu0 %2436 }
0x1709   :  { %v2440_v39 = vmul.f32 0.0078125, %v2437_v48 }
0x170b   :  { %v2442_v5 = vadd.f32 1e-05, %v2440_v39 }
0x170c   :  { %v2439_v49 = vpop.xlane.xlu1 %2438 }
0x170d   :  { %3468 = vrsqrt.f32 %v2442_v5  ;;  %v2441_v37 = vmul.f32 0.0078125, %v2439_v49 }
0x170f   :  { %v2443_v16 = vadd.f32 1e-05, %v2441_v37 }
0x1711   :  { %3470 = vrsqrt.f32 %v2443_v16 }
0x1717   :  { %v3469_v4 = vpop.eup %3468 }
0x1718   :  { %v2446_v7 = vmul.f32 %v3469_v4, %v2432_v61 }
0x171a   :  { %v2454_v51 = vmul.f32 %v2532_v6, %v2446_v7 }
0x171b   :  { %v3471_v11 = vpop.eup %3470 }
0x171c   :  { %v2447_v22 = vmul.f32 %v3471_v11, %v2433_v3  ;;  %v2462_v12 = vadd.f32 %v2533_v18, %v2454_v51 }
0x171e   :  { %v2455_v13 = vmul.f32 %v2532_v6, %v2447_v22  ;;  %2464 = vst [vmem:[#allocation26] sm:$0xff] %v2462_v12 }
0x1720   :  { %v2463_v14 = vadd.f32 %v2533_v18, %v2455_v13 }
0x1722   :  { %2465 = vst [vmem:[#allocation26 + $0x8] sm:$0xff] %v2463_v14 }
0x1723   :  { %3813 = shalt.err (!%p3810_p12)
}
0x1724   :  { %s3814_s2 = scalar_lea.hbm %s4382_s15, 256 }
0x1725   :  { %p3815_p13 = scmp.ne.s32.totalorder %s4382_s15, %s3814_s2  ;;  %p3818_p0 = scmp.lt.u32.totalorder %s3814_s2, %s4382_s15 }
0x1727   :  { %p3820_p1 = pnand %p3818_p0, %p3815_p13 }
0x1729   :  { %3823 = shalt.err (!%p3820_p1)
}
0x172a   :  { %2477 = dma.vmem_to_hbm [thread:$0]  %s2472_s13, 256, %s4382_s15, [#allocation4], %s4389_s20, %s4389_s20, %s3845_s16  }
0x172b   :  { %3840 = dma.done.wait [#allocation4], 256  }
0x172c   :  { %3841 = vsyncadd [#allocation4], 4294967040 }
0x172d   :  { %2481 = vsyncpa [#allocation3], 1 }
0x172e   :  { %2482 = vsyncpa [#allocation6], 1 }
0x172f   :  { %2483 = vsyncpa [#allocation9], 1 }
0x1730   :  { %2484 = vsyncpa [#allocation12], 1 }
0x1731   :  { %2485 = vsyncpa [#allocation15], 1 }
0x1732   :  { %2486 = vsyncpa [#allocation18], 1 }
0x1733   :  { %2487 = vsyncpa [#allocation21], 1 }
0x1734   :  { %2488 = vsyncpa [#allocation24], 1 }
0x1735   :  { %2489 = vsyncpa [#allocation4], 1 }

</bundles_post_ra>
